<compile_context>
chip_gen: v7x
topology: tpu7x:2x2x1
jax: 0.10.0
libtpu: 0.0.40
codegen_flags: <defaults>
</compile_context>

<pallas_src>
import functools
import jax
import jax.numpy as jnp
from jax.experimental import pallas as pl
from jax.experimental.pallas import tpu as pltpu

EPS = 1e-5  # nn.LayerNorm default eps


def _layernorm(x, gamma, beta):
    mean = jnp.mean(x, axis=-1, keepdims=True)
    var = jnp.mean((x - mean) ** 2, axis=-1, keepdims=True)
    return (x - mean) * jax.lax.rsqrt(var + EPS) * gamma + beta


def _erf(x):
    # Abramowitz & Stegun 7.1.26, max abs error 1.5e-7; uses only exp (EUP).
    a1, a2, a3, a4, a5 = 0.254829592, -0.284496736, 1.421413741, -1.453152027, 1.061405429
    p = 0.3275911
    ax = jnp.abs(x)
    t = 1.0 / (1.0 + p * ax)
    poly = ((((a5 * t + a4) * t + a3) * t + a2) * t + a1) * t
    y = 1.0 - poly * jnp.exp(-ax * ax)
    return jnp.where(x >= 0.0, y, -y)


def _gelu(x):
    # exact erf-GELU (PyTorch nn.GELU() default)
    return 0.5 * x * (1.0 + _erf(x * 0.7071067811865475))


def _encoder_kernel(head, x_ref, g1_ref, b1_ref, wqkv_ref, bqkv_ref,
                    wo_ref, bo_ref, g2_ref, b2_ref,
                    w1_ref, c1_ref, w2_ref, c2_ref, out_ref):
    x = x_ref[0]                       # (N, F) f32, one batch element
    n, f = x.shape
    dh = f // head
    inv_sqrt_d = 1.0 / (f ** 0.5)      # NOTE: module scales by sqrt(feats), NOT sqrt(d_head)

    def mm(a_f32, w_bf16):             # bf16 MXU operands, f32 accumulation
        return jnp.dot(a_f32.astype(jnp.bfloat16), w_bf16,
                       preferred_element_type=jnp.float32)

    # --- LayerNorm 1 + fused QKV projection (one MXU dot) ---
    ln1 = _layernorm(x, g1_ref[...], b1_ref[...])
    qkv = mm(ln1, wqkv_ref[...]) + bqkv_ref[...]           # (N, 3F) f32
    q = jax.lax.slice(qkv, (0, 0 * f), (n, 1 * f))
    k = jax.lax.slice(qkv, (0, 1 * f), (n, 2 * f))
    v = jax.lax.slice(qkv, (0, 2 * f), (n, 3 * f))

    # --- per-head attention on static d_head column slices; accumulate the
    #     output projection per head from the matching d_head rows of Wo.
    #     head is small -> unrolled Python loop (switch to lax.fori_loop if
    #     head / N grow). ---
    wo = wo_ref[...]                   # (F, F) bf16
    o = jnp.zeros((n, f), jnp.float32)
    for h in range(head):
        lo = h * dh
        qh = jax.lax.slice(q, (0, lo), (n, lo + dh)).astype(jnp.bfloat16)  # (N, dh)
        kh = jax.lax.slice(k, (0, lo), (n, lo + dh)).astype(jnp.bfloat16)
        vh = jax.lax.slice(v, (0, lo), (n, lo + dh)).astype(jnp.bfloat16)
        s = jax.lax.dot_general(qh, kh, (((1,), (1,)), ((), ())),
                                preferred_element_type=jnp.float32) * inv_sqrt_d
        s = s - jnp.max(s, axis=-1, keepdims=True)
        e = jnp.exp(s)
        p_h = e * pl.reciprocal(jnp.sum(e, axis=-1, keepdims=True), approx=True)
        attn_h = jnp.dot(p_h.astype(jnp.bfloat16), vh,
                         preferred_element_type=jnp.float32)               # (N, dh)
        wo_h = jax.lax.slice(wo, (lo, 0), (lo + dh, f))                    # (dh, F)
        o = o + jnp.dot(attn_h.astype(jnp.bfloat16), wo_h,
                        preferred_element_type=jnp.float32)
    o = o + bo_ref[...]
    out1 = o + x                       # residual 1 (dropout p=0.0 -> identity)

    # --- LayerNorm 2 + MLP: Linear -> GELU -> Linear -> GELU ---
    ln2 = _layernorm(out1, g2_ref[...], b2_ref[...])
    h1 = _gelu(mm(ln2, w1_ref[...]) + c1_ref[...])
    h2 = _gelu(mm(h1, w2_ref[...]) + c2_ref[...])
    out_ref[0] = h2 + out1             # residual 2


def transformer_encoder(x, params, head):
    B, N, F = x.shape

    # Fuse q/k/v weights -> (F, 3F) and biases -> (1, 3F) in the wrapper (one
    # MXU matmul inside the kernel).  Matmul weights go in as bf16 (MXU operand
    # dtype, half the DMA bytes); biases / LayerNorm params stay f32.
    wqkv = jnp.concatenate([params["wq_t"], params["wk_t"], params["wv_t"]],
                           axis=1).astype(jnp.bfloat16)
    bqkv = jnp.concatenate([params["bq"], params["bk"], params["bv"]], axis=1)
    args = [
        params["g1"], params["b1"],
        wqkv, bqkv,
        params["wo_t"].astype(jnp.bfloat16), params["bo"],
        params["g2"], params["b2"],
        params["w1_t"].astype(jnp.bfloat16), params["c1"],
        params["w2_t"].astype(jnp.bfloat16), params["c2"],
    ]

    def full_spec(a):
        return pl.BlockSpec(a.shape, lambda b: (0,) * a.ndim)

    in_specs = [pl.BlockSpec((1, N, F), lambda b: (b, 0, 0))] + [full_spec(a) for a in args]
    out_spec = pl.BlockSpec((1, N, F), lambda b: (b, 0, 0))

    return pl.pallas_call(
        functools.partial(_encoder_kernel, head),
        out_shape=jax.ShapeDtypeStruct((B, N, F), jnp.float32),
        grid=(B,),
        in_specs=in_specs,
        out_specs=out_spec,
        compiler_params=pltpu.CompilerParams(dimension_semantics=("parallel",)),
    )(x, *args)


def init_params(key, F, Hm):
    ks = jax.random.split(key, 12)
    s = 0.1
    nrm = lambda k, shape: (s * jax.random.normal(k, shape)).astype(jnp.float32)
    return {
        # LayerNorm 1 / 2 (PyTorch default init: weight=1, bias=0)
        "g1": jnp.ones((1, F), jnp.float32), "b1": jnp.zeros((1, F), jnp.float32),
        "g2": jnp.ones((1, F), jnp.float32), "b2": jnp.zeros((1, F), jnp.float32),
        # q / k / v / o projections, stored as (in, out)
        "wq_t": nrm(ks[0], (F, F)), "bq": nrm(ks[1], (1, F)),
        "wk_t": nrm(ks[2], (F, F)), "bk": nrm(ks[3], (1, F)),
        "wv_t": nrm(ks[4], (F, F)), "bv": nrm(ks[5], (1, F)),
        "wo_t": nrm(ks[6], (F, F)), "bo": nrm(ks[7], (1, F)),
        # MLP: Linear(F, Hm) -> GELU -> Linear(Hm, F) -> GELU
        "w1_t": nrm(ks[8], (F, Hm)), "c1": nrm(ks[9], (1, Hm)),
        "w2_t": nrm(ks[10], (Hm, F)), "c2": nrm(ks[11], (1, F)),
    }


def reference(x, p, head):
    # pure-JAX f32 reference mirroring the PyTorch forward pass (exact erf-GELU)
    B, N, F = x.shape
    dh = F // head

    def ln(z, g, b):
        m = z.mean(-1, keepdims=True)
        v = ((z - m) ** 2).mean(-1, keepdims=True)
        return (z - m) / jnp.sqrt(v + EPS) * g + b

    gelu = lambda z: jax.nn.gelu(z, approximate=False)
    ln1 = ln(x, p["g1"], p["b1"])
    q = ln1 @ p["wq_t"] + p["bq"]
    k = ln1 @ p["wk_t"] + p["bk"]
    v = ln1 @ p["wv_t"] + p["bv"]
    qh = q.reshape(B, N, head, dh).transpose(0, 2, 1, 3)
    kh = k.reshape(B, N, head, dh).transpose(0, 2, 1, 3)
    vh = v.reshape(B, N, head, dh).transpose(0, 2, 1, 3)
    score = jax.nn.softmax(jnp.einsum('bhif,bhjf->bhij', qh, kh) / (F ** 0.5), axis=-1)
    attn = jnp.einsum('bhij,bhjf->bhif', score, vh).transpose(0, 2, 1, 3).reshape(B, N, F)
    o = attn @ p["wo_t"] + p["bo"]
    out1 = o + x
    ln2 = ln(out1, p["g2"], p["b2"])
    h1 = gelu(ln2 @ p["w1_t"] + p["c1"])
    h2 = gelu(h1 @ p["w2_t"] + p["c2"])
    return h2 + out1


if __name__ == "__main__":
    B, N, F, HEAD, HM = 2, 8, 32, 8, 64
    key = jax.random.PRNGKey(0)
    kx, kp = jax.random.split(key)
    x = jax.random.normal(kx, (B, N, F), dtype=jnp.float32)
    params = init_params(kp, F, HM)

    out = jax.block_until_ready(transformer_encoder(x, params, HEAD))
    ref = jax.block_until_ready(reference(x, params, HEAD))

    assert out.shape == (B, N, F)
    max_err = float(jnp.max(jnp.abs(out - ref)))
    # bf16 MXU operands + approx softmax reciprocal vs. a pure-f32 reference.
    assert max_err < 2e-2, f"max abs err = {max_err}"
    print("KERNEL_OK")
</pallas_src>

<mosaic_0001>
module attributes {stable_mosaic.version = 11 : i64} {
  func.func @_encoder_kernel(%arg0: i32, %arg1: memref<1x8x32xf32, #tpu.memory_space<vmem>>, %arg2: memref<1x32xf32, #tpu.memory_space<vmem>>, %arg3: memref<1x32xf32, #tpu.memory_space<vmem>>, %arg4: memref<32x96xbf16, #tpu.memory_space<vmem>>, %arg5: memref<1x96xf32, #tpu.memory_space<vmem>>, %arg6: memref<32x32xbf16, #tpu.memory_space<vmem>>, %arg7: memref<1x32xf32, #tpu.memory_space<vmem>>, %arg8: memref<1x32xf32, #tpu.memory_space<vmem>>, %arg9: memref<1x32xf32, #tpu.memory_space<vmem>>, %arg10: memref<32x64xbf16, #tpu.memory_space<vmem>>, %arg11: memref<1x64xf32, #tpu.memory_space<vmem>>, %arg12: memref<64x32xbf16, #tpu.memory_space<vmem>>, %arg13: memref<1x32xf32, #tpu.memory_space<vmem>>, %arg14: memref<1x8x32xf32, #tpu.memory_space<vmem>>) attributes {dimension_semantics = [#tpu.dimension_semantics<parallel>], iteration_bounds = array<i64: 2>, scalar_prefetch = 0 : i64, scratch_operands = 0 : i64, tpu.core_type = #tpu.core_type<tc>, window_params = [{transform_indices = @transform_0, window_bounds = array<i64: 1, 8, 32>}, {pipeline_mode = #tpu.pipeline_mode<synchronous>, transform_indices = @transform_1, window_bounds = array<i64: 1, 32>}, {pipeline_mode = #tpu.pipeline_mode<synchronous>, transform_indices = @transform_2, window_bounds = array<i64: 1, 32>}, {pipeline_mode = #tpu.pipeline_mode<synchronous>, transform_indices = @transform_3, window_bounds = array<i64: 32, 96>}, {pipeline_mode = #tpu.pipeline_mode<synchronous>, transform_indices = @transform_4, window_bounds = array<i64: 1, 96>}, {pipeline_mode = #tpu.pipeline_mode<synchronous>, transform_indices = @transform_5, window_bounds = array<i64: 32, 32>}, {pipeline_mode = #tpu.pipeline_mode<synchronous>, transform_indices = @transform_6, window_bounds = array<i64: 1, 32>}, {pipeline_mode = #tpu.pipeline_mode<synchronous>, transform_indices = @transform_7, window_bounds = array<i64: 1, 32>}, {pipeline_mode = #tpu.pipeline_mode<synchronous>, transform_indices = @transform_8, window_bounds = array<i64: 1, 32>}, {pipeline_mode = #tpu.pipeline_mode<synchronous>, transform_indices = @transform_9, window_bounds = array<i64: 32, 64>}, {pipeline_mode = #tpu.pipeline_mode<synchronous>, transform_indices = @transform_10, window_bounds = array<i64: 1, 64>}, {pipeline_mode = #tpu.pipeline_mode<synchronous>, transform_indices = @transform_11, window_bounds = array<i64: 64, 32>}, {pipeline_mode = #tpu.pipeline_mode<synchronous>, transform_indices = @transform_12, window_bounds = array<i64: 1, 32>}, {transform_indices = @transform_13, window_bounds = array<i64: 1, 8, 32>}]} {
    %c0 = arith.constant 0 : index
    %c0_0 = arith.constant 0 : index
    %c0_1 = arith.constant 0 : index
    %0 = vector.load %arg1[%c0, %c0_0, %c0_1] : memref<1x8x32xf32, #tpu.memory_space<vmem>>, vector<1x8x32xf32>
    %1 = vector.shape_cast %0 : vector<1x8x32xf32> to vector<8x32xf32>
    %c0_2 = arith.constant 0 : index
    %c0_3 = arith.constant 0 : index
    %2 = vector.load %arg2[%c0_2, %c0_3] : memref<1x32xf32, #tpu.memory_space<vmem>>, vector<1x32xf32>
    %c0_4 = arith.constant 0 : index
    %c0_5 = arith.constant 0 : index
    %3 = vector.load %arg3[%c0_4, %c0_5] : memref<1x32xf32, #tpu.memory_space<vmem>>, vector<1x32xf32>
    %cst = arith.constant dense<0.000000e+00> : vector<8xf32>
    %4 = vector.multi_reduction <add>, %1, %cst [1] : vector<8x32xf32> to vector<8xf32>
    %5 = vector.shape_cast %4 : vector<8xf32> to vector<8x1xf32>
    %cst_6 = arith.constant 3.200000e+01 : f32
    %6 = vector.broadcast %cst_6 : f32 to vector<8x1xf32>
    %7 = arith.divf %5, %6 : vector<8x1xf32>
    %8 = vector.broadcast %7 : vector<8x1xf32> to vector<8x32xf32>
    %9 = arith.subf %1, %8 : vector<8x32xf32>
    %10 = arith.mulf %9, %9 : vector<8x32xf32>
    %cst_7 = arith.constant dense<0.000000e+00> : vector<8xf32>
    %11 = vector.multi_reduction <add>, %10, %cst_7 [1] : vector<8x32xf32> to vector<8xf32>
    %12 = vector.shape_cast %11 : vector<8xf32> to vector<8x1xf32>
    %cst_8 = arith.constant 3.200000e+01 : f32
    %13 = vector.broadcast %cst_8 : f32 to vector<8x1xf32>
    %14 = arith.divf %12, %13 : vector<8x1xf32>
    %15 = vector.broadcast %7 : vector<8x1xf32> to vector<8x32xf32>
    %16 = arith.subf %1, %15 : vector<8x32xf32>
    %cst_9 = arith.constant 9.99999974E-6 : f32
    %17 = vector.broadcast %cst_9 : f32 to vector<8x1xf32>
    %18 = arith.addf %14, %17 : vector<8x1xf32>
    %19 = math.rsqrt %18 : vector<8x1xf32>
    %20 = vector.broadcast %19 : vector<8x1xf32> to vector<8x32xf32>
    %21 = arith.mulf %16, %20 : vector<8x32xf32>
    %22 = vector.broadcast %2 : vector<1x32xf32> to vector<8x32xf32>
    %23 = arith.mulf %21, %22 : vector<8x32xf32>
    %24 = vector.broadcast %3 : vector<1x32xf32> to vector<8x32xf32>
    %25 = arith.addf %23, %24 : vector<8x32xf32>
    %c0_10 = arith.constant 0 : index
    %c0_11 = arith.constant 0 : index
    %26 = vector.load %arg4[%c0_10, %c0_11] : memref<32x96xbf16, #tpu.memory_space<vmem>>, vector<32x96xbf16>
    %27 = arith.truncf %25 : vector<8x32xf32> to vector<8x32xbf16>
    %cst_12 = arith.constant dense<0.000000e+00> : vector<8x96xf32>
    %28 = tpu.matmul %27, %26, %cst_12 {dimension_numbers = #tpu.dot_dimension_numbers<[1], [0], [0], [1], [0, 0, 1, 1], [], []>} : vector<8x32xbf16>, vector<32x96xbf16>, vector<8x96xf32> -> vector<8x96xf32>
    %c0_13 = arith.constant 0 : index
    %c0_14 = arith.constant 0 : index
    %29 = vector.load %arg5[%c0_13, %c0_14] : memref<1x96xf32, #tpu.memory_space<vmem>>, vector<1x96xf32>
    %30 = vector.broadcast %29 : vector<1x96xf32> to vector<8x96xf32>
    %31 = arith.addf %28, %30 : vector<8x96xf32>
    %32 = vector.extract_strided_slice %31 {offsets = [0, 0], sizes = [8, 32], strides = [1, 1]} : vector<8x96xf32> to vector<8x32xf32>
    %33 = vector.extract_strided_slice %31 {offsets = [0, 32], sizes = [8, 32], strides = [1, 1]} : vector<8x96xf32> to vector<8x32xf32>
    %34 = vector.extract_strided_slice %31 {offsets = [0, 64], sizes = [8, 32], strides = [1, 1]} : vector<8x96xf32> to vector<8x32xf32>
    %c0_15 = arith.constant 0 : index
    %c0_16 = arith.constant 0 : index
    %35 = vector.load %arg6[%c0_15, %c0_16] : memref<32x32xbf16, #tpu.memory_space<vmem>>, vector<32x32xbf16>
    %cst_17 = arith.constant 0.000000e+00 : f32
    %36 = vector.broadcast %cst_17 : f32 to vector<8x32xf32>
    %37 = vector.extract_strided_slice %32 {offsets = [0, 0], sizes = [8, 4], strides = [1, 1]} : vector<8x32xf32> to vector<8x4xf32>
    %38 = arith.truncf %37 : vector<8x4xf32> to vector<8x4xbf16>
    %39 = vector.extract_strided_slice %33 {offsets = [0, 0], sizes = [8, 4], strides = [1, 1]} : vector<8x32xf32> to vector<8x4xf32>
    %40 = arith.truncf %39 : vector<8x4xf32> to vector<8x4xbf16>
    %41 = vector.extract_strided_slice %34 {offsets = [0, 0], sizes = [8, 4], strides = [1, 1]} : vector<8x32xf32> to vector<8x4xf32>
    %42 = arith.truncf %41 : vector<8x4xf32> to vector<8x4xbf16>
    %cst_18 = arith.constant dense<0.000000e+00> : vector<8x8xf32>
    %43 = tpu.matmul %38, %40, %cst_18 {dimension_numbers = #tpu.dot_dimension_numbers<[1], [1], [0], [0], [0, 0, 1, 0], [], []>} : vector<8x4xbf16>, vector<8x4xbf16>, vector<8x8xf32> -> vector<8x8xf32>
    %cst_19 = arith.constant 0.176776692 : f32
    %44 = vector.broadcast %cst_19 : f32 to vector<8x8xf32>
    %45 = arith.mulf %43, %44 : vector<8x8xf32>
    %cst_20 = arith.constant dense<0xFF800000> : vector<8xf32>
    %46 = vector.multi_reduction <maximumf>, %45, %cst_20 [1] : vector<8x8xf32> to vector<8xf32>
    %47 = vector.shape_cast %46 : vector<8xf32> to vector<8x1xf32>
    %48 = vector.broadcast %47 : vector<8x1xf32> to vector<8x8xf32>
    %49 = arith.subf %45, %48 : vector<8x8xf32>
    %50 = math.exp %49 : vector<8x8xf32>
    %cst_21 = arith.constant dense<0.000000e+00> : vector<8xf32>
    %51 = vector.multi_reduction <add>, %50, %cst_21 [1] : vector<8x8xf32> to vector<8xf32>
    %52 = vector.shape_cast %51 : vector<8xf32> to vector<8x1xf32>
    %53 = tpu.reciprocal %52 {approx = true} : vector<8x1xf32> -> vector<8x1xf32>
    %54 = vector.broadcast %53 : vector<8x1xf32> to vector<8x8xf32>
    %55 = arith.mulf %50, %54 : vector<8x8xf32>
    %56 = arith.truncf %55 : vector<8x8xf32> to vector<8x8xbf16>
    %cst_22 = arith.constant dense<0.000000e+00> : vector<8x4xf32>
    %57 = tpu.matmul %56, %42, %cst_22 {dimension_numbers = #tpu.dot_dimension_numbers<[1], [0], [0], [1], [0, 0, 1, 1], [], []>} : vector<8x8xbf16>, vector<8x4xbf16>, vector<8x4xf32> -> vector<8x4xf32>
    %58 = vector.extract_strided_slice %35 {offsets = [0, 0], sizes = [4, 32], strides = [1, 1]} : vector<32x32xbf16> to vector<4x32xbf16>
    %59 = arith.truncf %57 : vector<8x4xf32> to vector<8x4xbf16>
    %cst_23 = arith.constant dense<0.000000e+00> : vector<8x32xf32>
    %60 = tpu.matmul %59, %58, %cst_23 {dimension_numbers = #tpu.dot_dimension_numbers<[1], [0], [0], [1], [0, 0, 1, 1], [], []>} : vector<8x4xbf16>, vector<4x32xbf16>, vector<8x32xf32> -> vector<8x32xf32>
    %61 = arith.addf %36, %60 : vector<8x32xf32>
    %62 = vector.extract_strided_slice %32 {offsets = [0, 4], sizes = [8, 4], strides = [1, 1]} : vector<8x32xf32> to vector<8x4xf32>
    %63 = arith.truncf %62 : vector<8x4xf32> to vector<8x4xbf16>
    %64 = vector.extract_strided_slice %33 {offsets = [0, 4], sizes = [8, 4], strides = [1, 1]} : vector<8x32xf32> to vector<8x4xf32>
    %65 = arith.truncf %64 : vector<8x4xf32> to vector<8x4xbf16>
    %66 = vector.extract_strided_slice %34 {offsets = [0, 4], sizes = [8, 4], strides = [1, 1]} : vector<8x32xf32> to vector<8x4xf32>
    %67 = arith.truncf %66 : vector<8x4xf32> to vector<8x4xbf16>
    %cst_24 = arith.constant dense<0.000000e+00> : vector<8x8xf32>
    %68 = tpu.matmul %63, %65, %cst_24 {dimension_numbers = #tpu.dot_dimension_numbers<[1], [1], [0], [0], [0, 0, 1, 0], [], []>} : vector<8x4xbf16>, vector<8x4xbf16>, vector<8x8xf32> -> vector<8x8xf32>
    %cst_25 = arith.constant 0.176776692 : f32
    %69 = vector.broadcast %cst_25 : f32 to vector<8x8xf32>
    %70 = arith.mulf %68, %69 : vector<8x8xf32>
    %cst_26 = arith.constant dense<0xFF800000> : vector<8xf32>
    %71 = vector.multi_reduction <maximumf>, %70, %cst_26 [1] : vector<8x8xf32> to vector<8xf32>
    %72 = vector.shape_cast %71 : vector<8xf32> to vector<8x1xf32>
    %73 = vector.broadcast %72 : vector<8x1xf32> to vector<8x8xf32>
    %74 = arith.subf %70, %73 : vector<8x8xf32>
    %75 = math.exp %74 : vector<8x8xf32>
    %cst_27 = arith.constant dense<0.000000e+00> : vector<8xf32>
    %76 = vector.multi_reduction <add>, %75, %cst_27 [1] : vector<8x8xf32> to vector<8xf32>
    %77 = vector.shape_cast %76 : vector<8xf32> to vector<8x1xf32>
    %78 = tpu.reciprocal %77 {approx = true} : vector<8x1xf32> -> vector<8x1xf32>
    %79 = vector.broadcast %78 : vector<8x1xf32> to vector<8x8xf32>
    %80 = arith.mulf %75, %79 : vector<8x8xf32>
    %81 = arith.truncf %80 : vector<8x8xf32> to vector<8x8xbf16>
    %cst_28 = arith.constant dense<0.000000e+00> : vector<8x4xf32>
    %82 = tpu.matmul %81, %67, %cst_28 {dimension_numbers = #tpu.dot_dimension_numbers<[1], [0], [0], [1], [0, 0, 1, 1], [], []>} : vector<8x8xbf16>, vector<8x4xbf16>, vector<8x4xf32> -> vector<8x4xf32>
    %83 = vector.extract_strided_slice %35 {offsets = [4, 0], sizes = [4, 32], strides = [1, 1]} : vector<32x32xbf16> to vector<4x32xbf16>
    %84 = arith.truncf %82 : vector<8x4xf32> to vector<8x4xbf16>
    %cst_29 = arith.constant dense<0.000000e+00> : vector<8x32xf32>
    %85 = tpu.matmul %84, %83, %cst_29 {dimension_numbers = #tpu.dot_dimension_numbers<[1], [0], [0], [1], [0, 0, 1, 1], [], []>} : vector<8x4xbf16>, vector<4x32xbf16>, vector<8x32xf32> -> vector<8x32xf32>
    %86 = arith.addf %61, %85 : vector<8x32xf32>
    %87 = vector.extract_strided_slice %32 {offsets = [0, 8], sizes = [8, 4], strides = [1, 1]} : vector<8x32xf32> to vector<8x4xf32>
    %88 = arith.truncf %87 : vector<8x4xf32> to vector<8x4xbf16>
    %89 = vector.extract_strided_slice %33 {offsets = [0, 8], sizes = [8, 4], strides = [1, 1]} : vector<8x32xf32> to vector<8x4xf32>
    %90 = arith.truncf %89 : vector<8x4xf32> to vector<8x4xbf16>
    %91 = vector.extract_strided_slice %34 {offsets = [0, 8], sizes = [8, 4], strides = [1, 1]} : vector<8x32xf32> to vector<8x4xf32>
    %92 = arith.truncf %91 : vector<8x4xf32> to vector<8x4xbf16>
    %cst_30 = arith.constant dense<0.000000e+00> : vector<8x8xf32>
    %93 = tpu.matmul %88, %90, %cst_30 {dimension_numbers = #tpu.dot_dimension_numbers<[1], [1], [0], [0], [0, 0, 1, 0], [], []>} : vector<8x4xbf16>, vector<8x4xbf16>, vector<8x8xf32> -> vector<8x8xf32>
    %cst_31 = arith.constant 0.176776692 : f32
    %94 = vector.broadcast %cst_31 : f32 to vector<8x8xf32>
    %95 = arith.mulf %93, %94 : vector<8x8xf32>
    %cst_32 = arith.constant dense<0xFF800000> : vector<8xf32>
    %96 = vector.multi_reduction <maximumf>, %95, %cst_32 [1] : vector<8x8xf32> to vector<8xf32>
    %97 = vector.shape_cast %96 : vector<8xf32> to vector<8x1xf32>
    %98 = vector.broadcast %97 : vector<8x1xf32> to vector<8x8xf32>
    %99 = arith.subf %95, %98 : vector<8x8xf32>
    %100 = math.exp %99 : vector<8x8xf32>
    %cst_33 = arith.constant dense<0.000000e+00> : vector<8xf32>
    %101 = vector.multi_reduction <add>, %100, %cst_33 [1] : vector<8x8xf32> to vector<8xf32>
    %102 = vector.shape_cast %101 : vector<8xf32> to vector<8x1xf32>
    %103 = tpu.reciprocal %102 {approx = true} : vector<8x1xf32> -> vector<8x1xf32>
    %104 = vector.broadcast %103 : vector<8x1xf32> to vector<8x8xf32>
    %105 = arith.mulf %100, %104 : vector<8x8xf32>
    %106 = arith.truncf %105 : vector<8x8xf32> to vector<8x8xbf16>
    %cst_34 = arith.constant dense<0.000000e+00> : vector<8x4xf32>
    %107 = tpu.matmul %106, %92, %cst_34 {dimension_numbers = #tpu.dot_dimension_numbers<[1], [0], [0], [1], [0, 0, 1, 1], [], []>} : vector<8x8xbf16>, vector<8x4xbf16>, vector<8x4xf32> -> vector<8x4xf32>
    %108 = vector.extract_strided_slice %35 {offsets = [8, 0], sizes = [4, 32], strides = [1, 1]} : vector<32x32xbf16> to vector<4x32xbf16>
    %109 = arith.truncf %107 : vector<8x4xf32> to vector<8x4xbf16>
    %cst_35 = arith.constant dense<0.000000e+00> : vector<8x32xf32>
    %110 = tpu.matmul %109, %108, %cst_35 {dimension_numbers = #tpu.dot_dimension_numbers<[1], [0], [0], [1], [0, 0, 1, 1], [], []>} : vector<8x4xbf16>, vector<4x32xbf16>, vector<8x32xf32> -> vector<8x32xf32>
    %111 = arith.addf %86, %110 : vector<8x32xf32>
    %112 = vector.extract_strided_slice %32 {offsets = [0, 12], sizes = [8, 4], strides = [1, 1]} : vector<8x32xf32> to vector<8x4xf32>
    %113 = arith.truncf %112 : vector<8x4xf32> to vector<8x4xbf16>
    %114 = vector.extract_strided_slice %33 {offsets = [0, 12], sizes = [8, 4], strides = [1, 1]} : vector<8x32xf32> to vector<8x4xf32>
    %115 = arith.truncf %114 : vector<8x4xf32> to vector<8x4xbf16>
    %116 = vector.extract_strided_slice %34 {offsets = [0, 12], sizes = [8, 4], strides = [1, 1]} : vector<8x32xf32> to vector<8x4xf32>
    %117 = arith.truncf %116 : vector<8x4xf32> to vector<8x4xbf16>
    %cst_36 = arith.constant dense<0.000000e+00> : vector<8x8xf32>
    %118 = tpu.matmul %113, %115, %cst_36 {dimension_numbers = #tpu.dot_dimension_numbers<[1], [1], [0], [0], [0, 0, 1, 0], [], []>} : vector<8x4xbf16>, vector<8x4xbf16>, vector<8x8xf32> -> vector<8x8xf32>
    %cst_37 = arith.constant 0.176776692 : f32
    %119 = vector.broadcast %cst_37 : f32 to vector<8x8xf32>
    %120 = arith.mulf %118, %119 : vector<8x8xf32>
    %cst_38 = arith.constant dense<0xFF800000> : vector<8xf32>
    %121 = vector.multi_reduction <maximumf>, %120, %cst_38 [1] : vector<8x8xf32> to vector<8xf32>
    %122 = vector.shape_cast %121 : vector<8xf32> to vector<8x1xf32>
    %123 = vector.broadcast %122 : vector<8x1xf32> to vector<8x8xf32>
    %124 = arith.subf %120, %123 : vector<8x8xf32>
    %125 = math.exp %124 : vector<8x8xf32>
    %cst_39 = arith.constant dense<0.000000e+00> : vector<8xf32>
    %126 = vector.multi_reduction <add>, %125, %cst_39 [1] : vector<8x8xf32> to vector<8xf32>
    %127 = vector.shape_cast %126 : vector<8xf32> to vector<8x1xf32>
    %128 = tpu.reciprocal %127 {approx = true} : vector<8x1xf32> -> vector<8x1xf32>
    %129 = vector.broadcast %128 : vector<8x1xf32> to vector<8x8xf32>
    %130 = arith.mulf %125, %129 : vector<8x8xf32>
    %131 = arith.truncf %130 : vector<8x8xf32> to vector<8x8xbf16>
    %cst_40 = arith.constant dense<0.000000e+00> : vector<8x4xf32>
    %132 = tpu.matmul %131, %117, %cst_40 {dimension_numbers = #tpu.dot_dimension_numbers<[1], [0], [0], [1], [0, 0, 1, 1], [], []>} : vector<8x8xbf16>, vector<8x4xbf16>, vector<8x4xf32> -> vector<8x4xf32>
    %133 = vector.extract_strided_slice %35 {offsets = [12, 0], sizes = [4, 32], strides = [1, 1]} : vector<32x32xbf16> to vector<4x32xbf16>
    %134 = arith.truncf %132 : vector<8x4xf32> to vector<8x4xbf16>
    %cst_41 = arith.constant dense<0.000000e+00> : vector<8x32xf32>
    %135 = tpu.matmul %134, %133, %cst_41 {dimension_numbers = #tpu.dot_dimension_numbers<[1], [0], [0], [1], [0, 0, 1, 1], [], []>} : vector<8x4xbf16>, vector<4x32xbf16>, vector<8x32xf32> -> vector<8x32xf32>
    %136 = arith.addf %111, %135 : vector<8x32xf32>
    %137 = vector.extract_strided_slice %32 {offsets = [0, 16], sizes = [8, 4], strides = [1, 1]} : vector<8x32xf32> to vector<8x4xf32>
    %138 = arith.truncf %137 : vector<8x4xf32> to vector<8x4xbf16>
    %139 = vector.extract_strided_slice %33 {offsets = [0, 16], sizes = [8, 4], strides = [1, 1]} : vector<8x32xf32> to vector<8x4xf32>
    %140 = arith.truncf %139 : vector<8x4xf32> to vector<8x4xbf16>
    %141 = vector.extract_strided_slice %34 {offsets = [0, 16], sizes = [8, 4], strides = [1, 1]} : vector<8x32xf32> to vector<8x4xf32>
    %142 = arith.truncf %141 : vector<8x4xf32> to vector<8x4xbf16>
    %cst_42 = arith.constant dense<0.000000e+00> : vector<8x8xf32>
    %143 = tpu.matmul %138, %140, %cst_42 {dimension_numbers = #tpu.dot_dimension_numbers<[1], [1], [0], [0], [0, 0, 1, 0], [], []>} : vector<8x4xbf16>, vector<8x4xbf16>, vector<8x8xf32> -> vector<8x8xf32>
    %cst_43 = arith.constant 0.176776692 : f32
    %144 = vector.broadcast %cst_43 : f32 to vector<8x8xf32>
    %145 = arith.mulf %143, %144 : vector<8x8xf32>
    %cst_44 = arith.constant dense<0xFF800000> : vector<8xf32>
    %146 = vector.multi_reduction <maximumf>, %145, %cst_44 [1] : vector<8x8xf32> to vector<8xf32>
    %147 = vector.shape_cast %146 : vector<8xf32> to vector<8x1xf32>
    %148 = vector.broadcast %147 : vector<8x1xf32> to vector<8x8xf32>
    %149 = arith.subf %145, %148 : vector<8x8xf32>
    %150 = math.exp %149 : vector<8x8xf32>
    %cst_45 = arith.constant dense<0.000000e+00> : vector<8xf32>
    %151 = vector.multi_reduction <add>, %150, %cst_45 [1] : vector<8x8xf32> to vector<8xf32>
    %152 = vector.shape_cast %151 : vector<8xf32> to vector<8x1xf32>
    %153 = tpu.reciprocal %152 {approx = true} : vector<8x1xf32> -> vector<8x1xf32>
    %154 = vector.broadcast %153 : vector<8x1xf32> to vector<8x8xf32>
    %155 = arith.mulf %150, %154 : vector<8x8xf32>
    %156 = arith.truncf %155 : vector<8x8xf32> to vector<8x8xbf16>
    %cst_46 = arith.constant dense<0.000000e+00> : vector<8x4xf32>
    %157 = tpu.matmul %156, %142, %cst_46 {dimension_numbers = #tpu.dot_dimension_numbers<[1], [0], [0], [1], [0, 0, 1, 1], [], []>} : vector<8x8xbf16>, vector<8x4xbf16>, vector<8x4xf32> -> vector<8x4xf32>
    %158 = vector.extract_strided_slice %35 {offsets = [16, 0], sizes = [4, 32], strides = [1, 1]} : vector<32x32xbf16> to vector<4x32xbf16>
    %159 = arith.truncf %157 : vector<8x4xf32> to vector<8x4xbf16>
    %cst_47 = arith.constant dense<0.000000e+00> : vector<8x32xf32>
    %160 = tpu.matmul %159, %158, %cst_47 {dimension_numbers = #tpu.dot_dimension_numbers<[1], [0], [0], [1], [0, 0, 1, 1], [], []>} : vector<8x4xbf16>, vector<4x32xbf16>, vector<8x32xf32> -> vector<8x32xf32>
    %161 = arith.addf %136, %160 : vector<8x32xf32>
    %162 = vector.extract_strided_slice %32 {offsets = [0, 20], sizes = [8, 4], strides = [1, 1]} : vector<8x32xf32> to vector<8x4xf32>
    %163 = arith.truncf %162 : vector<8x4xf32> to vector<8x4xbf16>
    %164 = vector.extract_strided_slice %33 {offsets = [0, 20], sizes = [8, 4], strides = [1, 1]} : vector<8x32xf32> to vector<8x4xf32>
    %165 = arith.truncf %164 : vector<8x4xf32> to vector<8x4xbf16>
    %166 = vector.extract_strided_slice %34 {offsets = [0, 20], sizes = [8, 4], strides = [1, 1]} : vector<8x32xf32> to vector<8x4xf32>
    %167 = arith.truncf %166 : vector<8x4xf32> to vector<8x4xbf16>
    %cst_48 = arith.constant dense<0.000000e+00> : vector<8x8xf32>
    %168 = tpu.matmul %163, %165, %cst_48 {dimension_numbers = #tpu.dot_dimension_numbers<[1], [1], [0], [0], [0, 0, 1, 0], [], []>} : vector<8x4xbf16>, vector<8x4xbf16>, vector<8x8xf32> -> vector<8x8xf32>
    %cst_49 = arith.constant 0.176776692 : f32
    %169 = vector.broadcast %cst_49 : f32 to vector<8x8xf32>
    %170 = arith.mulf %168, %169 : vector<8x8xf32>
    %cst_50 = arith.constant dense<0xFF800000> : vector<8xf32>
    %171 = vector.multi_reduction <maximumf>, %170, %cst_50 [1] : vector<8x8xf32> to vector<8xf32>
    %172 = vector.shape_cast %171 : vector<8xf32> to vector<8x1xf32>
    %173 = vector.broadcast %172 : vector<8x1xf32> to vector<8x8xf32>
    %174 = arith.subf %170, %173 : vector<8x8xf32>
    %175 = math.exp %174 : vector<8x8xf32>
    %cst_51 = arith.constant dense<0.000000e+00> : vector<8xf32>
    %176 = vector.multi_reduction <add>, %175, %cst_51 [1] : vector<8x8xf32> to vector<8xf32>
    %177 = vector.shape_cast %176 : vector<8xf32> to vector<8x1xf32>
    %178 = tpu.reciprocal %177 {approx = true} : vector<8x1xf32> -> vector<8x1xf32>
    %179 = vector.broadcast %178 : vector<8x1xf32> to vector<8x8xf32>
    %180 = arith.mulf %175, %179 : vector<8x8xf32>
    %181 = arith.truncf %180 : vector<8x8xf32> to vector<8x8xbf16>
    %cst_52 = arith.constant dense<0.000000e+00> : vector<8x4xf32>
    %182 = tpu.matmul %181, %167, %cst_52 {dimension_numbers = #tpu.dot_dimension_numbers<[1], [0], [0], [1], [0, 0, 1, 1], [], []>} : vector<8x8xbf16>, vector<8x4xbf16>, vector<8x4xf32> -> vector<8x4xf32>
    %183 = vector.extract_strided_slice %35 {offsets = [20, 0], sizes = [4, 32], strides = [1, 1]} : vector<32x32xbf16> to vector<4x32xbf16>
    %184 = arith.truncf %182 : vector<8x4xf32> to vector<8x4xbf16>
    %cst_53 = arith.constant dense<0.000000e+00> : vector<8x32xf32>
    %185 = tpu.matmul %184, %183, %cst_53 {dimension_numbers = #tpu.dot_dimension_numbers<[1], [0], [0], [1], [0, 0, 1, 1], [], []>} : vector<8x4xbf16>, vector<4x32xbf16>, vector<8x32xf32> -> vector<8x32xf32>
    %186 = arith.addf %161, %185 : vector<8x32xf32>
    %187 = vector.extract_strided_slice %32 {offsets = [0, 24], sizes = [8, 4], strides = [1, 1]} : vector<8x32xf32> to vector<8x4xf32>
    %188 = arith.truncf %187 : vector<8x4xf32> to vector<8x4xbf16>
    %189 = vector.extract_strided_slice %33 {offsets = [0, 24], sizes = [8, 4], strides = [1, 1]} : vector<8x32xf32> to vector<8x4xf32>
    %190 = arith.truncf %189 : vector<8x4xf32> to vector<8x4xbf16>
    %191 = vector.extract_strided_slice %34 {offsets = [0, 24], sizes = [8, 4], strides = [1, 1]} : vector<8x32xf32> to vector<8x4xf32>
    %192 = arith.truncf %191 : vector<8x4xf32> to vector<8x4xbf16>
    %cst_54 = arith.constant dense<0.000000e+00> : vector<8x8xf32>
    %193 = tpu.matmul %188, %190, %cst_54 {dimension_numbers = #tpu.dot_dimension_numbers<[1], [1], [0], [0], [0, 0, 1, 0], [], []>} : vector<8x4xbf16>, vector<8x4xbf16>, vector<8x8xf32> -> vector<8x8xf32>
    %cst_55 = arith.constant 0.176776692 : f32
    %194 = vector.broadcast %cst_55 : f32 to vector<8x8xf32>
    %195 = arith.mulf %193, %194 : vector<8x8xf32>
    %cst_56 = arith.constant dense<0xFF800000> : vector<8xf32>
    %196 = vector.multi_reduction <maximumf>, %195, %cst_56 [1] : vector<8x8xf32> to vector<8xf32>
    %197 = vector.shape_cast %196 : vector<8xf32> to vector<8x1xf32>
    %198 = vector.broadcast %197 : vector<8x1xf32> to vector<8x8xf32>
    %199 = arith.subf %195, %198 : vector<8x8xf32>
    %200 = math.exp %199 : vector<8x8xf32>
    %cst_57 = arith.constant dense<0.000000e+00> : vector<8xf32>
    %201 = vector.multi_reduction <add>, %200, %cst_57 [1] : vector<8x8xf32> to vector<8xf32>
    %202 = vector.shape_cast %201 : vector<8xf32> to vector<8x1xf32>
    %203 = tpu.reciprocal %202 {approx = true} : vector<8x1xf32> -> vector<8x1xf32>
    %204 = vector.broadcast %203 : vector<8x1xf32> to vector<8x8xf32>
    %205 = arith.mulf %200, %204 : vector<8x8xf32>
    %206 = arith.truncf %205 : vector<8x8xf32> to vector<8x8xbf16>
    %cst_58 = arith.constant dense<0.000000e+00> : vector<8x4xf32>
    %207 = tpu.matmul %206, %192, %cst_58 {dimension_numbers = #tpu.dot_dimension_numbers<[1], [0], [0], [1], [0, 0, 1, 1], [], []>} : vector<8x8xbf16>, vector<8x4xbf16>, vector<8x4xf32> -> vector<8x4xf32>
    %208 = vector.extract_strided_slice %35 {offsets = [24, 0], sizes = [4, 32], strides = [1, 1]} : vector<32x32xbf16> to vector<4x32xbf16>
    %209 = arith.truncf %207 : vector<8x4xf32> to vector<8x4xbf16>
    %cst_59 = arith.constant dense<0.000000e+00> : vector<8x32xf32>
    %210 = tpu.matmul %209, %208, %cst_59 {dimension_numbers = #tpu.dot_dimension_numbers<[1], [0], [0], [1], [0, 0, 1, 1], [], []>} : vector<8x4xbf16>, vector<4x32xbf16>, vector<8x32xf32> -> vector<8x32xf32>
    %211 = arith.addf %186, %210 : vector<8x32xf32>
    %212 = vector.extract_strided_slice %32 {offsets = [0, 28], sizes = [8, 4], strides = [1, 1]} : vector<8x32xf32> to vector<8x4xf32>
    %213 = arith.truncf %212 : vector<8x4xf32> to vector<8x4xbf16>
    %214 = vector.extract_strided_slice %33 {offsets = [0, 28], sizes = [8, 4], strides = [1, 1]} : vector<8x32xf32> to vector<8x4xf32>
    %215 = arith.truncf %214 : vector<8x4xf32> to vector<8x4xbf16>
    %216 = vector.extract_strided_slice %34 {offsets = [0, 28], sizes = [8, 4], strides = [1, 1]} : vector<8x32xf32> to vector<8x4xf32>
    %217 = arith.truncf %216 : vector<8x4xf32> to vector<8x4xbf16>
    %cst_60 = arith.constant dense<0.000000e+00> : vector<8x8xf32>
    %218 = tpu.matmul %213, %215, %cst_60 {dimension_numbers = #tpu.dot_dimension_numbers<[1], [1], [0], [0], [0, 0, 1, 0], [], []>} : vector<8x4xbf16>, vector<8x4xbf16>, vector<8x8xf32> -> vector<8x8xf32>
    %cst_61 = arith.constant 0.176776692 : f32
    %219 = vector.broadcast %cst_61 : f32 to vector<8x8xf32>
    %220 = arith.mulf %218, %219 : vector<8x8xf32>
    %cst_62 = arith.constant dense<0xFF800000> : vector<8xf32>
    %221 = vector.multi_reduction <maximumf>, %220, %cst_62 [1] : vector<8x8xf32> to vector<8xf32>
    %222 = vector.shape_cast %221 : vector<8xf32> to vector<8x1xf32>
    %223 = vector.broadcast %222 : vector<8x1xf32> to vector<8x8xf32>
    %224 = arith.subf %220, %223 : vector<8x8xf32>
    %225 = math.exp %224 : vector<8x8xf32>
    %cst_63 = arith.constant dense<0.000000e+00> : vector<8xf32>
    %226 = vector.multi_reduction <add>, %225, %cst_63 [1] : vector<8x8xf32> to vector<8xf32>
    %227 = vector.shape_cast %226 : vector<8xf32> to vector<8x1xf32>
    %228 = tpu.reciprocal %227 {approx = true} : vector<8x1xf32> -> vector<8x1xf32>
    %229 = vector.broadcast %228 : vector<8x1xf32> to vector<8x8xf32>
    %230 = arith.mulf %225, %229 : vector<8x8xf32>
    %231 = arith.truncf %230 : vector<8x8xf32> to vector<8x8xbf16>
    %cst_64 = arith.constant dense<0.000000e+00> : vector<8x4xf32>
    %232 = tpu.matmul %231, %217, %cst_64 {dimension_numbers = #tpu.dot_dimension_numbers<[1], [0], [0], [1], [0, 0, 1, 1], [], []>} : vector<8x8xbf16>, vector<8x4xbf16>, vector<8x4xf32> -> vector<8x4xf32>
    %233 = vector.extract_strided_slice %35 {offsets = [28, 0], sizes = [4, 32], strides = [1, 1]} : vector<32x32xbf16> to vector<4x32xbf16>
    %234 = arith.truncf %232 : vector<8x4xf32> to vector<8x4xbf16>
    %cst_65 = arith.constant dense<0.000000e+00> : vector<8x32xf32>
    %235 = tpu.matmul %234, %233, %cst_65 {dimension_numbers = #tpu.dot_dimension_numbers<[1], [0], [0], [1], [0, 0, 1, 1], [], []>} : vector<8x4xbf16>, vector<4x32xbf16>, vector<8x32xf32> -> vector<8x32xf32>
    %236 = arith.addf %211, %235 : vector<8x32xf32>
    %c0_66 = arith.constant 0 : index
    %c0_67 = arith.constant 0 : index
    %237 = vector.load %arg7[%c0_66, %c0_67] : memref<1x32xf32, #tpu.memory_space<vmem>>, vector<1x32xf32>
    %238 = vector.broadcast %237 : vector<1x32xf32> to vector<8x32xf32>
    %239 = arith.addf %236, %238 : vector<8x32xf32>
    %240 = arith.addf %239, %1 : vector<8x32xf32>
    %c0_68 = arith.constant 0 : index
    %c0_69 = arith.constant 0 : index
    %241 = vector.load %arg8[%c0_68, %c0_69] : memref<1x32xf32, #tpu.memory_space<vmem>>, vector<1x32xf32>
    %c0_70 = arith.constant 0 : index
    %c0_71 = arith.constant 0 : index
    %242 = vector.load %arg9[%c0_70, %c0_71] : memref<1x32xf32, #tpu.memory_space<vmem>>, vector<1x32xf32>
    %cst_72 = arith.constant dense<0.000000e+00> : vector<8xf32>
    %243 = vector.multi_reduction <add>, %240, %cst_72 [1] : vector<8x32xf32> to vector<8xf32>
    %244 = vector.shape_cast %243 : vector<8xf32> to vector<8x1xf32>
    %cst_73 = arith.constant 3.200000e+01 : f32
    %245 = vector.broadcast %cst_73 : f32 to vector<8x1xf32>
    %246 = arith.divf %244, %245 : vector<8x1xf32>
    %247 = vector.broadcast %246 : vector<8x1xf32> to vector<8x32xf32>
    %248 = arith.subf %240, %247 : vector<8x32xf32>
    %249 = arith.mulf %248, %248 : vector<8x32xf32>
    %cst_74 = arith.constant dense<0.000000e+00> : vector<8xf32>
    %250 = vector.multi_reduction <add>, %249, %cst_74 [1] : vector<8x32xf32> to vector<8xf32>
    %251 = vector.shape_cast %250 : vector<8xf32> to vector<8x1xf32>
    %cst_75 = arith.constant 3.200000e+01 : f32
    %252 = vector.broadcast %cst_75 : f32 to vector<8x1xf32>
    %253 = arith.divf %251, %252 : vector<8x1xf32>
    %254 = vector.broadcast %246 : vector<8x1xf32> to vector<8x32xf32>
    %255 = arith.subf %240, %254 : vector<8x32xf32>
    %cst_76 = arith.constant 9.99999974E-6 : f32
    %256 = vector.broadcast %cst_76 : f32 to vector<8x1xf32>
    %257 = arith.addf %253, %256 : vector<8x1xf32>
    %258 = math.rsqrt %257 : vector<8x1xf32>
    %259 = vector.broadcast %258 : vector<8x1xf32> to vector<8x32xf32>
    %260 = arith.mulf %255, %259 : vector<8x32xf32>
    %261 = vector.broadcast %241 : vector<1x32xf32> to vector<8x32xf32>
    %262 = arith.mulf %260, %261 : vector<8x32xf32>
    %263 = vector.broadcast %242 : vector<1x32xf32> to vector<8x32xf32>
    %264 = arith.addf %262, %263 : vector<8x32xf32>
    %c0_77 = arith.constant 0 : index
    %c0_78 = arith.constant 0 : index
    %265 = vector.load %arg10[%c0_77, %c0_78] : memref<32x64xbf16, #tpu.memory_space<vmem>>, vector<32x64xbf16>
    %266 = arith.truncf %264 : vector<8x32xf32> to vector<8x32xbf16>
    %cst_79 = arith.constant dense<0.000000e+00> : vector<8x64xf32>
    %267 = tpu.matmul %266, %265, %cst_79 {dimension_numbers = #tpu.dot_dimension_numbers<[1], [0], [0], [1], [0, 0, 1, 1], [], []>} : vector<8x32xbf16>, vector<32x64xbf16>, vector<8x64xf32> -> vector<8x64xf32>
    %c0_80 = arith.constant 0 : index
    %c0_81 = arith.constant 0 : index
    %268 = vector.load %arg11[%c0_80, %c0_81] : memref<1x64xf32, #tpu.memory_space<vmem>>, vector<1x64xf32>
    %269 = vector.broadcast %268 : vector<1x64xf32> to vector<8x64xf32>
    %270 = arith.addf %267, %269 : vector<8x64xf32>
    %cst_82 = arith.constant 5.000000e-01 : f32
    %271 = vector.broadcast %cst_82 : f32 to vector<8x64xf32>
    %272 = arith.mulf %271, %270 : vector<8x64xf32>
    %cst_83 = arith.constant 0.707106769 : f32
    %273 = vector.broadcast %cst_83 : f32 to vector<8x64xf32>
    %274 = arith.mulf %270, %273 : vector<8x64xf32>
    %275 = math.absf %274 : vector<8x64xf32>
    %cst_84 = arith.constant 0.327591091 : f32
    %276 = vector.broadcast %cst_84 : f32 to vector<8x64xf32>
    %277 = arith.mulf %276, %275 : vector<8x64xf32>
    %cst_85 = arith.constant 1.000000e+00 : f32
    %278 = vector.broadcast %cst_85 : f32 to vector<8x64xf32>
    %279 = arith.addf %278, %277 : vector<8x64xf32>
    %cst_86 = arith.constant 1.000000e+00 : f32
    %280 = vector.broadcast %cst_86 : f32 to vector<8x64xf32>
    %281 = arith.divf %280, %279 : vector<8x64xf32>
    %cst_87 = arith.constant 1.06140542 : f32
    %282 = vector.broadcast %cst_87 : f32 to vector<8x64xf32>
    %283 = arith.mulf %282, %281 : vector<8x64xf32>
    %cst_88 = arith.constant -1.45315206 : f32
    %284 = vector.broadcast %cst_88 : f32 to vector<8x64xf32>
    %285 = arith.addf %283, %284 : vector<8x64xf32>
    %286 = arith.mulf %285, %281 : vector<8x64xf32>
    %cst_89 = arith.constant 1.42141378 : f32
    %287 = vector.broadcast %cst_89 : f32 to vector<8x64xf32>
    %288 = arith.addf %286, %287 : vector<8x64xf32>
    %289 = arith.mulf %288, %281 : vector<8x64xf32>
    %cst_90 = arith.constant -0.284496725 : f32
    %290 = vector.broadcast %cst_90 : f32 to vector<8x64xf32>
    %291 = arith.addf %289, %290 : vector<8x64xf32>
    %292 = arith.mulf %291, %281 : vector<8x64xf32>
    %cst_91 = arith.constant 0.254829586 : f32
    %293 = vector.broadcast %cst_91 : f32 to vector<8x64xf32>
    %294 = arith.addf %292, %293 : vector<8x64xf32>
    %295 = arith.mulf %294, %281 : vector<8x64xf32>
    %cst_92 = arith.constant 0.000000e+00 : f32
    %296 = vector.broadcast %cst_92 : f32 to vector<8x64xf32>
    %297 = arith.subf %296, %275 : vector<8x64xf32>
    %298 = arith.mulf %297, %275 : vector<8x64xf32>
    %299 = math.exp %298 : vector<8x64xf32>
    %300 = arith.mulf %295, %299 : vector<8x64xf32>
    %cst_93 = arith.constant 1.000000e+00 : f32
    %301 = vector.broadcast %cst_93 : f32 to vector<8x64xf32>
    %302 = arith.subf %301, %300 : vector<8x64xf32>
    %cst_94 = arith.constant 0.000000e+00 : f32
    %303 = vector.broadcast %cst_94 : f32 to vector<8x64xf32>
    %304 = arith.cmpf oge, %274, %303 : vector<8x64xf32>
    %cst_95 = arith.constant 0.000000e+00 : f32
    %305 = vector.broadcast %cst_95 : f32 to vector<8x64xf32>
    %306 = arith.subf %305, %302 : vector<8x64xf32>
    %307 = arith.select %304, %302, %306 : vector<8x64xi1>, vector<8x64xf32>
    %cst_96 = arith.constant 1.000000e+00 : f32
    %308 = vector.broadcast %cst_96 : f32 to vector<8x64xf32>
    %309 = arith.addf %308, %307 : vector<8x64xf32>
    %310 = arith.mulf %272, %309 : vector<8x64xf32>
    %c0_97 = arith.constant 0 : index
    %c0_98 = arith.constant 0 : index
    %311 = vector.load %arg12[%c0_97, %c0_98] : memref<64x32xbf16, #tpu.memory_space<vmem>>, vector<64x32xbf16>
    %312 = arith.truncf %310 : vector<8x64xf32> to vector<8x64xbf16>
    %cst_99 = arith.constant dense<0.000000e+00> : vector<8x32xf32>
    %313 = tpu.matmul %312, %311, %cst_99 {dimension_numbers = #tpu.dot_dimension_numbers<[1], [0], [0], [1], [0, 0, 1, 1], [], []>} : vector<8x64xbf16>, vector<64x32xbf16>, vector<8x32xf32> -> vector<8x32xf32>
    %c0_100 = arith.constant 0 : index
    %c0_101 = arith.constant 0 : index
    %314 = vector.load %arg13[%c0_100, %c0_101] : memref<1x32xf32, #tpu.memory_space<vmem>>, vector<1x32xf32>
    %315 = vector.broadcast %314 : vector<1x32xf32> to vector<8x32xf32>
    %316 = arith.addf %313, %315 : vector<8x32xf32>
    %cst_102 = arith.constant 5.000000e-01 : f32
    %317 = vector.broadcast %cst_102 : f32 to vector<8x32xf32>
    %318 = arith.mulf %317, %316 : vector<8x32xf32>
    %cst_103 = arith.constant 0.707106769 : f32
    %319 = vector.broadcast %cst_103 : f32 to vector<8x32xf32>
    %320 = arith.mulf %316, %319 : vector<8x32xf32>
    %321 = math.absf %320 : vector<8x32xf32>
    %cst_104 = arith.constant 0.327591091 : f32
    %322 = vector.broadcast %cst_104 : f32 to vector<8x32xf32>
    %323 = arith.mulf %322, %321 : vector<8x32xf32>
    %cst_105 = arith.constant 1.000000e+00 : f32
    %324 = vector.broadcast %cst_105 : f32 to vector<8x32xf32>
    %325 = arith.addf %324, %323 : vector<8x32xf32>
    %cst_106 = arith.constant 1.000000e+00 : f32
    %326 = vector.broadcast %cst_106 : f32 to vector<8x32xf32>
    %327 = arith.divf %326, %325 : vector<8x32xf32>
    %cst_107 = arith.constant 1.06140542 : f32
    %328 = vector.broadcast %cst_107 : f32 to vector<8x32xf32>
    %329 = arith.mulf %328, %327 : vector<8x32xf32>
    %cst_108 = arith.constant -1.45315206 : f32
    %330 = vector.broadcast %cst_108 : f32 to vector<8x32xf32>
    %331 = arith.addf %329, %330 : vector<8x32xf32>
    %332 = arith.mulf %331, %327 : vector<8x32xf32>
    %cst_109 = arith.constant 1.42141378 : f32
    %333 = vector.broadcast %cst_109 : f32 to vector<8x32xf32>
    %334 = arith.addf %332, %333 : vector<8x32xf32>
    %335 = arith.mulf %334, %327 : vector<8x32xf32>
    %cst_110 = arith.constant -0.284496725 : f32
    %336 = vector.broadcast %cst_110 : f32 to vector<8x32xf32>
    %337 = arith.addf %335, %336 : vector<8x32xf32>
    %338 = arith.mulf %337, %327 : vector<8x32xf32>
    %cst_111 = arith.constant 0.254829586 : f32
    %339 = vector.broadcast %cst_111 : f32 to vector<8x32xf32>
    %340 = arith.addf %338, %339 : vector<8x32xf32>
    %341 = arith.mulf %340, %327 : vector<8x32xf32>
    %cst_112 = arith.constant 0.000000e+00 : f32
    %342 = vector.broadcast %cst_112 : f32 to vector<8x32xf32>
    %343 = arith.subf %342, %321 : vector<8x32xf32>
    %344 = arith.mulf %343, %321 : vector<8x32xf32>
    %345 = math.exp %344 : vector<8x32xf32>
    %346 = arith.mulf %341, %345 : vector<8x32xf32>
    %cst_113 = arith.constant 1.000000e+00 : f32
    %347 = vector.broadcast %cst_113 : f32 to vector<8x32xf32>
    %348 = arith.subf %347, %346 : vector<8x32xf32>
    %cst_114 = arith.constant 0.000000e+00 : f32
    %349 = vector.broadcast %cst_114 : f32 to vector<8x32xf32>
    %350 = arith.cmpf oge, %320, %349 : vector<8x32xf32>
    %cst_115 = arith.constant 0.000000e+00 : f32
    %351 = vector.broadcast %cst_115 : f32 to vector<8x32xf32>
    %352 = arith.subf %351, %348 : vector<8x32xf32>
    %353 = arith.select %350, %348, %352 : vector<8x32xi1>, vector<8x32xf32>
    %cst_116 = arith.constant 1.000000e+00 : f32
    %354 = vector.broadcast %cst_116 : f32 to vector<8x32xf32>
    %355 = arith.addf %354, %353 : vector<8x32xf32>
    %356 = arith.mulf %318, %355 : vector<8x32xf32>
    %357 = arith.addf %356, %240 : vector<8x32xf32>
    %c0_117 = arith.constant 0 : index
    %c0_118 = arith.constant 0 : index
    %c0_119 = arith.constant 0 : index
    %358 = vector.load %arg14[%c0_117, %c0_118, %c0_119] : memref<1x8x32xf32, #tpu.memory_space<vmem>>, vector<1x8x32xf32>
    %359 = vector.shape_cast %358 : vector<1x8x32xf32> to vector<8x32xf32>
    %360 = vector.shape_cast %357 : vector<8x32xf32> to vector<1x8x32xf32>
    tpu.vector_store %arg14[%c0_117, %c0_118, %c0_119], %360 {strides = array<i32>} : memref<1x8x32xf32, #tpu.memory_space<vmem>>, vector<1x8x32xf32>,
    return
  }
  func.func @transform_0(%arg0: i32) -> (i32, i32, i32) {
    %c0_i32 = arith.constant 0 : i32
    %c0_i32_0 = arith.constant 0 : i32
    %c0_i32_1 = arith.constant 0 : i32
    return %arg0, %c0_i32, %c0_i32_0 : i32, i32, i32
  }
  func.func @transform_1(%arg0: i32) -> (i32, i32) {
    %c0_i32 = arith.constant 0 : i32
    %c0_i32_0 = arith.constant 0 : i32
    %c0_i32_1 = arith.constant 0 : i32
    return %c0_i32, %c0_i32_0 : i32, i32
  }
  func.func @transform_2(%arg0: i32) -> (i32, i32) {
    %c0_i32 = arith.constant 0 : i32
    %c0_i32_0 = arith.constant 0 : i32
    %c0_i32_1 = arith.constant 0 : i32
    return %c0_i32, %c0_i32_0 : i32, i32
  }
  func.func @transform_3(%arg0: i32) -> (i32, i32) {
    %c0_i32 = arith.constant 0 : i32
    %c0_i32_0 = arith.constant 0 : i32
    %c0_i32_1 = arith.constant 0 : i32
    return %c0_i32, %c0_i32_0 : i32, i32
  }
  func.func @transform_4(%arg0: i32) -> (i32, i32) {
    %c0_i32 = arith.constant 0 : i32
    %c0_i32_0 = arith.constant 0 : i32
    %c0_i32_1 = arith.constant 0 : i32
    return %c0_i32, %c0_i32_0 : i32, i32
  }
  func.func @transform_5(%arg0: i32) -> (i32, i32) {
    %c0_i32 = arith.constant 0 : i32
    %c0_i32_0 = arith.constant 0 : i32
    %c0_i32_1 = arith.constant 0 : i32
    return %c0_i32, %c0_i32_0 : i32, i32
  }
  func.func @transform_6(%arg0: i32) -> (i32, i32) {
    %c0_i32 = arith.constant 0 : i32
    %c0_i32_0 = arith.constant 0 : i32
    %c0_i32_1 = arith.constant 0 : i32
    return %c0_i32, %c0_i32_0 : i32, i32
  }
  func.func @transform_7(%arg0: i32) -> (i32, i32) {
    %c0_i32 = arith.constant 0 : i32
    %c0_i32_0 = arith.constant 0 : i32
    %c0_i32_1 = arith.constant 0 : i32
    return %c0_i32, %c0_i32_0 : i32, i32
  }
  func.func @transform_8(%arg0: i32) -> (i32, i32) {
    %c0_i32 = arith.constant 0 : i32
    %c0_i32_0 = arith.constant 0 : i32
    %c0_i32_1 = arith.constant 0 : i32
    return %c0_i32, %c0_i32_0 : i32, i32
  }
  func.func @transform_9(%arg0: i32) -> (i32, i32) {
    %c0_i32 = arith.constant 0 : i32
    %c0_i32_0 = arith.constant 0 : i32
    %c0_i32_1 = arith.constant 0 : i32
    return %c0_i32, %c0_i32_0 : i32, i32
  }
  func.func @transform_10(%arg0: i32) -> (i32, i32) {
    %c0_i32 = arith.constant 0 : i32
    %c0_i32_0 = arith.constant 0 : i32
    %c0_i32_1 = arith.constant 0 : i32
    return %c0_i32, %c0_i32_0 : i32, i32
  }
  func.func @transform_11(%arg0: i32) -> (i32, i32) {
    %c0_i32 = arith.constant 0 : i32
    %c0_i32_0 = arith.constant 0 : i32
    %c0_i32_1 = arith.constant 0 : i32
    return %c0_i32, %c0_i32_0 : i32, i32
  }
  func.func @transform_12(%arg0: i32) -> (i32, i32) {
    %c0_i32 = arith.constant 0 : i32
    %c0_i32_0 = arith.constant 0 : i32
    %c0_i32_1 = arith.constant 0 : i32
    return %c0_i32, %c0_i32_0 : i32, i32
  }
  func.func @transform_13(%arg0: i32) -> (i32, i32, i32) {
    %c0_i32 = arith.constant 0 : i32
    %c0_i32_0 = arith.constant 0 : i32
    %c0_i32_1 = arith.constant 0 : i32
    return %arg0, %c0_i32, %c0_i32_0 : i32, i32, i32
  }
}

</mosaic_0001>

<bundles_post_ra>
// kernel: tpu_custom_call.1
= control target key start
LH: loop header
LB: loop body
LE: loop exit
PB: predicated region body
PF: predicated region fallthrough
CT: control target
= control target key end

     0   :  { %s3450_s0 = inlined_call_operand.vmem [shape: f32[2,8,32], index: 0, kind: input, shape index: {}]   ;;  %s3451_s1 = inlined_call_operand.vmem [shape: f32[1,32], index: 1, kind: input, shape index: {}]   ;;  %s3452_s2 = inlined_call_operand.vmem [shape: f32[1,32], index: 2, kind: input, shape index: {}]   ;;  %s3453_s3 = inlined_call_operand.vmem [shape: bf16[32,96], index: 3, kind: input, shape index: {}]   ;;  %s3454_s4 = inlined_call_operand.hbm [shape: f32[1,96], index: 4, kind: input, shape index: {}]   ;;  %s3455_s5 = inlined_call_operand.vmem [shape: bf16[32,32], index: 5, kind: input, shape index: {}]   ;;  %s3456_s6 = inlined_call_operand.hbm [shape: f32[1,32], index: 6, kind: input, shape index: {}]   ;;  %s3457_s7 = inlined_call_operand.hbm [shape: f32[1,32], index: 7, kind: input, shape index: {}]   ;;  %s3458_s8 = inlined_call_operand.hbm [shape: f32[1,32], index: 8, kind: input, shape index: {}]   ;;  %s3459_s9 = inlined_call_operand.vmem [shape: bf16[32,64], index: 9, kind: input, shape index: {}]   ;;  %s3460_s10 = inlined_call_operand.vmem [shape: f32[1,64], index: 10, kind: input, shape index: {}]   ;;  %s3461_s11 = inlined_call_operand.vmem [shape: bf16[64,32], index: 11, kind: input, shape index: {}]   ;;  %s3462_s12 = inlined_call_operand.vmem [shape: f32[1,32], index: 12, kind: input, shape index: {}]   ;;  %s3463_s13 = inlined_call_operand.hbm [shape: f32[2,8,32], index: 13, kind: output, shape index: {}]  }
   0x1   :  { %3474 = sst [smem:[#allocation21_spill]] %s3463_s13 }
   0x2   :  { %18 = vsyncpa [#allocation3], 0 }
   0x3   :  { %19 = vsyncpa [#allocation6], 0 }
   0x4   :  { %20 = vsyncpa [#allocation9], 0 }
   0x5   :  { %21 = vsyncpa [#allocation4], 0 }
   0x6   :  { %23 = vsyncpa [#allocation4 + $0x1], 0  ;;  %s2985_s25 = smov 0   ;;  %s2987_s26 = smov 0  }
   0x7   :  { %s2989_s27 = smov 0   ;;  %s2991_s28 = smov 0  }
   0x8 LB: > { %3475 = sst [smem:[#allocation15_spill]] %s2871_s25  ;;  %s3006_s29 = sadd.s32 4294967295, %s2883_s28   ;;  %s2883_s28 = sphi %s2991_s28, %s3499_s28   ;;  %s2879_s27 = sphi %s2989_s27, %s3501_s27   ;;  %s2875_s26 = sphi %s2987_s26, %s3503_s26   ;;  %s2871_s25 = sphi %s2985_s25, %s3502_s25  }
   0x9   : > { %3476 = sst [smem:[#allocation16_spill]] %s2879_s27  ;;  %s2240_s30 = sadd.s32 4294967294, %s2883_s28  }
   0xa   : > { %3477 = sst [smem:[#allocation17_spill]] %s2883_s28  ;;  %s3010_s14 = sadd.s32 1, %s2883_s28  }
   0xb   : > { %3478 = sst [smem:[#allocation18_spill]] %s3010_s14  ;;  %s314_s15 = sadd.s32 1, %s2879_s27 }
   0xc   : > { %s311_s16 = ssub.s32 %s2883_s28, %s3010_s14  ;;  %p324_p0 = scmp.ne.s32.totalorder %s2879_s27, %s2875_s26 }
   0xd   : > { %p312_p1 = scmp.eq.s32.totalorder %s311_s16, 0  ;;  %p325_p2 = scmp.eq.s32.totalorder %s3006_s29, 1 }
   0xe   : > { %p330_p3 = scmp.ne.s32.totalorder %s2875_s26, %s2871_s25  ;;  %p331_p4 = scmp.eq.s32.totalorder %s2240_s30, 1 }
   0xf   : > { %s3021_s17 = scalar_select %p312_p1, %s2879_s27, %s314_s15  }
  0x10   : > { %p3023_p5 = por %p325_p2, %p324_p0  ;;  %p3027_p6 = por %p331_p4, %p330_p3 }
  0x11   : > { %3479 = sst [smem:[#allocation19_spill]] %s3021_s17  ;;  %p2241_p7 = scmp.ge.s32.totalorder %s2883_s28, 1 }
  0x12   : > { %s3480_s18 = scalar_select %p3023_p5, 1, 0 }
  0x13   : > { %s3481_s19 = scalar_select %p3027_p6, 1, 0 }
  0x14   : > { %p338_p8 = scmp.lt.s32.totalorder %s2883_s28, 3  ;;  %p3469_p9 = scmp.eq.s32.totalorder %s3006_s29, 0 }
  0x15   : > { %3482 = sst [smem:[#allocation20_spill]] %s3481_s19  ;;  %s2885_s21 = smov [#allocation5]  }
  0x16   : > { %p3034_p10 = pnand %p2241_p7, %p338_p8  ;;  %s374_s22 = sshll.u32 %s2885_s21, 4  ;;  %s375_s22 = int_to_ptr.vmem [resolvable:$true] %s374_s22 }
  0x17   : > { %s2886_s23 = smov [#allocation2]   ;;  %s2887_s15 = smov [#allocation7]  }
  0x18   : > { %s3483_s20 = scalar_select %p3034_p10, 1, 0 }
  0x19   : > { %p2554_p11 = pneg %p3034_p10  ;;  %s360_s24 = sshll.u32 %s2886_s23, 4  ;;  %s3046_s24 = int_to_ptr.vmem [resolvable:$true] %s360_s24 }
  0x1a   : > { %s385_s16 = sshll.u32 %s2887_s15, 4  ;;  %s2697_s21 = scalar_lea.hbm %s3456_s6, 16  ;;  %s3048_s16 = int_to_ptr.vmem [resolvable:$true] %s385_s16 }
  0x1b   : > { %p3042_p12 = pnand %p3469_p9, %p2554_p11  ;;  %p2698_p13 = scmp.ne.s32.totalorder %s3456_s6, %s2697_s21 }
  0x1c   : > { %p2704_p3 = scmp.lt.u32.totalorder %s2697_s21, %s3456_s6 }
  0x1d   : > { %p3058_p0 = pneg %p3042_p12 }
  0x1f   : > { %p2700_p1 = pnand %p3058_p0, %p2698_p13 }
  0x21   : > { %p2701_p2 = pneg %p2700_p1 }
  0x23   : > { %p2706_p4 = pnand %p2704_p3, %p2701_p2 }
  0x25   : > { %2709 = shalt.err (!%p2706_p4)
}
  0x26   : > { %s2710_s27 = scalar_lea.vmem %s375_s22, 16  ;;  %s2717_s14 = scalar_lea.vmem %s375_s22, 32 }
  0x27   : > { %p2711_p7 = scmp.ne.s32.totalorder %s375_s22, %s2710_s27  ;;  %p2718_p9 = scmp.lt.s32.totalorder %s375_s22, %s375_s22 }
  0x28   : > { %p2719_p6 = scmp.lt.s32.totalorder %s2717_s14, %s2710_s27 }
  0x29   : > { %p2713_p8 = pnand %p2711_p7, %p3058_p0 }
  0x2a   : > { %p2720_p5 = por %p2719_p6, %p2718_p9 }
  0x2b   : > { %p2714_p11 = pneg %p2713_p8 }
  0x2d   : > { %p2721_p10 = pnand %p2720_p5, %p2714_p11 }
  0x2f   : > { %2724 = shalt.err (!%p2721_p10)
}
  0x30   : > { %2560 = dma.hbm_to_vmem [thread:$0]  (!%p3042_p12), %s3456_s6, 16, %s375_s22, [#allocation6]  }
  0x31   : > { %s2725_s15 = scalar_lea.hbm %s3454_s4, 16 }
  0x32   : > { %p2726_p13 = scmp.ne.s32.totalorder %s3454_s4, %s2725_s15  ;;  %p2732_p5 = scmp.lt.u32.totalorder %s2725_s15, %s3454_s4 }
  0x34   : > { %p2728_p1 = pnand %p2726_p13, %p3058_p0 }
  0x36   : > { %p2729_p6 = pneg %p2728_p1 }
  0x38   : > { %p2734_p9 = pnand %p2732_p5, %p2729_p6 }
  0x3a   : > { %2737 = shalt.err (!%p2734_p9)
}
  0x3b   : > { %s2738_s22 = scalar_lea.vmem %s3046_s24, 16  ;;  %s2745_s13 = scalar_lea.vmem %s3046_s24, 32 }
  0x3c   : > { %p2739_p10 = scmp.ne.s32.totalorder %s3046_s24, %s2738_s22  ;;  %p2746_p4 = scmp.lt.s32.totalorder %s3046_s24, %s3046_s24 }
  0x3d   : > { %p2747_p7 = scmp.lt.s32.totalorder %s2745_s13, %s2738_s22 }
  0x3e   : > { %p2741_p2 = pnand %p2739_p10, %p3058_p0 }
  0x3f   : > { %p2748_p8 = por %p2747_p7, %p2746_p4 }
  0x40   : > { %p2742_p3 = pneg %p2741_p2 }
  0x42   : > { %p2749_p11 = pnand %p2748_p8, %p2742_p3 }
  0x44   : > { %2752 = shalt.err (!%p2749_p11)
}
  0x45   : > { %2557 = dma.hbm_to_vmem [thread:$0]  (!%p3042_p12), %s3454_s4, 16, %s3046_s24, [#allocation3]  }
  0x46   : > { %s2753_s21 = scalar_lea.hbm %s3457_s7, 16 }
  0x47   : > { %p2754_p13 = scmp.ne.s32.totalorder %s3457_s7, %s2753_s21  ;;  %p2760_p5 = scmp.lt.u32.totalorder %s2753_s21, %s3457_s7 }
  0x49   : > { %p2756_p1 = pnand %p2754_p13, %p3058_p0 }
  0x4b   : > { %p2757_p6 = pneg %p2756_p1 }
  0x4d   : > { %p2762_p9 = pnand %p2760_p5, %p2757_p6 }
  0x4f   : > { %2765 = shalt.err (!%p2762_p9)
}
  0x50   : > { %s2766_s24 = scalar_lea.vmem %s3048_s16, 16  ;;  %s2773_s13 = scalar_lea.vmem %s3048_s16, 32 }
  0x51   : > { %p2767_p10 = scmp.ne.s32.totalorder %s3048_s16, %s2766_s24  ;;  %p2774_p4 = scmp.lt.s32.totalorder %s3048_s16, %s3048_s16 }
  0x52   : > { %p2775_p7 = scmp.lt.s32.totalorder %s2773_s13, %s2766_s24 }
  0x53   : > { %p2769_p2 = pnand %p2767_p10, %p3058_p0 }
  0x54   : > { %p2776_p8 = por %p2775_p7, %p2774_p4 }
  0x55   : > { %p2770_p3 = pneg %p2769_p2 }
  0x57   : > { %p2777_p11 = pnand %p2776_p8, %p2770_p3 }
  0x59   : > { %2780 = shalt.err (!%p2777_p11)
}
  0x5a   : > { %2563 = dma.hbm_to_vmem [thread:$0]  (!%p3042_p12), %s3457_s7, 16, %s3048_s16, [#allocation6]  }
  0x5b   : > { %s2888_s19 = smov [#allocation8]   ;;  %s2781_s27 = scalar_lea.hbm %s3458_s8, 16 }
  0x5c   : > { %s396_s25 = sshll.u32 %s2888_s19, 4  ;;  %p2782_p13 = scmp.ne.s32.totalorder %s3458_s8, %s2781_s27  ;;  %s397_s25 = int_to_ptr.vmem [resolvable:$true] %s396_s25 }
  0x5d   : > { %p2788_p5 = scmp.lt.u32.totalorder %s2781_s27, %s3458_s8 }
  0x5e   : > { %p2784_p1 = pnand %p2782_p13, %p3058_p0 }
  0x60   : > { %p2785_p6 = pneg %p2784_p1 }
  0x62   : > { %p2790_p9 = pnand %p2788_p5, %p2785_p6 }
  0x64   : > { %2793 = shalt.err (!%p2790_p9)
}
  0x65   : > { %s2794_s16 = scalar_lea.vmem %s397_s25, 16  ;;  %s2801_s28 = scalar_lea.vmem %s397_s25, 32 }
  0x66   : > { %p2795_p10 = scmp.ne.s32.totalorder %s397_s25, %s2794_s16  ;;  %p2802_p4 = scmp.lt.s32.totalorder %s397_s25, %s397_s25 }
  0x67   : > { %p2803_p7 = scmp.lt.s32.totalorder %s2801_s28, %s2794_s16 }
  0x68   : > { %p2797_p2 = pnand %p2795_p10, %p3058_p0 }
  0x69   : > { %p2804_p8 = por %p2803_p7, %p2802_p4 }
  0x6a   : > { %p2798_p3 = pneg %p2797_p2 }
  0x6c   : > { %p2805_p11 = pnand %p2804_p8, %p2798_p3 }
  0x6e   : > { %2808 = shalt.err (!%p2805_p11)
}
  0x6f   : > { %2566 = dma.hbm_to_vmem [thread:$0]  (!%p3042_p12), %s3458_s8, 16, %s397_s25, [#allocation9]  }
  0x70   : > { %p3486_p13 = scmp.ne.s32.totalorder %s3483_s20, 0 }
  0x71   : > { %p3487_p1 = scmp.eq.s32.totalorder (!%p3486_p13), %s3006_s29, 0 }
  0x72   : > { %428 = sbr.rel (%p3486_p13) target bundleno = 6060 (0x17ac), region = 72 }
  0x79   : > { %2854 = dma.done.wait (%p3487_p1), [#allocation3], 16   ;;  %p3488_p0 = pmov %p3487_p1 }
  0x7b   : > { %2856 = vsyncadd (%p3488_p0), [#allocation3], 4294967280  ;;  %p3489_p6 = pmov %p3488_p0 }
  0x7c   : > { %p3490_p5 = pmov %p3488_p0 }
  0x7d   : > { %2858 = dma.done.wait (%p3489_p6), [#allocation6], 32  }
  0x7e   : > { %2860 = vsyncadd (%p3490_p5), [#allocation6], 4294967264  ;;  %p3491_p9 = pmov %p3488_p0 }
  0x7f   : > { %p3492_p12 = pmov %p3488_p0 }
  0x80   : > { %2862 = dma.done.wait (%p3491_p9), [#allocation9], 16  }
  0x81   : > { %2864 = vsyncadd (%p3492_p12), [#allocation9], 4294967280  ;;  %p483_p10 = scmp.lt.s32.totalorder %s3006_s29, 1  ;;  %vm491_vm0 = vcmask 261120   ;;  %v2641_v7 = vld [vmem:[%s3453_s3] sm:$0xff]   ;;  %v2889_v8 = vmov 0.0  }
  0x82   : > { %2364 = vmatprep.subr.bf16.mxu1 %v2889_v8  ;;  %vm2890_vm1 = vmmov 0   ;;  %v2642_v9 = vld [vmem:[%s3453_s3 + $0x8] sm:$0xff]   ;;  %2378 = vmatprep.subr.bf16.mxu0 %v2889_v8  ;;  %v2254_v14 = vld [vmem:[%s3451_s1] ss:$0 sm:$0xff]  ;;  %s2891_s17 = smov 124   ;;  %s2892_s19 = smov 96  }
  0x83   : > { %s484_s20 = scalar_select %p483_p10, %s3006_s29, 1  ;;  %2368 = vmatprep.mubr.msk.bf16.mxu1 %vm2890_vm1, %v2889_v8  ;;  %2365 = vmatpush3.bf16.msra.mxu1 %v2641_v7  ;;  %v2255_v16 = vld [vmem:[%s3452_s2] ss:$0 sm:$0xff]  ;;  %vm595_vm2 = vcmask 31744   ;;  %vm643_vm3 = vcmask 64512   ;;  %vm661_vm4 = vcmask 1043456  }
  0x84   : > { %2366 = vmatprep.subr.bf16.mxu1 %v2889_v8  ;;  %2380 = vmatprep.mubr.msk.bf16.mxu0 %vm2890_vm1, %v2889_v8  ;;  %v2256_v20 = vld [vmem:[#allocation2] ss:$0 sm:$0xff]  ;;  %s2895_s23 = smov 64   ;;  %s2896_s25 = smov 88   ;;  %vm825_vm5 = vcmask 1041408   ;;  %vm2053_vm7 = vcmask 523264  }
  0x85   : > { %s2253_s30 = sshll.u32 %s484_s20, 3  ;;  %s2893_s20 = smov 92  }
  0x86   : > { %s486_s21 = scalar_lea.vmem %s3450_s0, %s2253_s30  ;;  %s2894_s30 = smov 60  }
  0x87   : > { %v3159_v0 = vld [vmem:[%s486_s21] sm:$0xff]  ;;  %2367 = vmatpush3.bf16.msra.mxu1 %v2642_v9  ;;  %s2897_s21 = smov 120   ;;  %s2898_s14 = smov 56  }
  0x88   : > { %v492_v1 = vsel %vm491_vm0, %v3159_v0, 0.0  ;;  %2372 = vmatprep.subr.bf16.mxu1 %v2889_v8  ;;  %s2899_s22 = smov 116   ;;  %s2900_s24 = smov 84  }
  0x89   : > { %493 = vadd.xlane.f32.xlu0 %v492_v1  ;;  %s2901_s28 = smov 80   ;;  %s2907_s15 = smov 72  }
  0x8a   : > { %s2908_s27 = smov 104   ;;  %s2912_s13 = smov 68  }
  0x8b   : > { %p3494_p3 = scmp.ne.s32.totalorder %s3480_s18, 0 }
 0x116   : > { %v494_v2 = vpop.xlane.xlu0 %493 }
 0x117   : > { %v496_v3 = vmul.f32 0.03125, %v494_v2 }
 0x119   : > { %v497_v4 = vsub.f32 %v3159_v0, %v496_v3  ;;  %v587_v3 = vld [vmem:[%s3455_s5] sm:$0xf] }
 0x11b   : > { %v498_v5 = vmul.f32 %v497_v4, %v497_v4 }
 0x11d   : > { %v499_v6 = vsel %vm491_vm0, %v498_v5, 0.0  ;;  %v873_v5 = vsel %vm825_vm5, %v587_v3, 0 }
 0x11e   : > { %500 = vadd.xlane.f32.xlu0 %v499_v6 }
 0x1ab   : > { %v501_v10 = vpop.xlane.xlu0 %500 }
 0x1ac   : > { %v502_v11 = vmul.f32 0.03125, %v501_v10 }
 0x1ae   : > { %v503_v12 = vadd.f32 1e-05, %v502_v11 }
 0x1b0   : > { %2653 = vrsqrt.f32 %v503_v12 }
 0x1ba   : > { %v2654_v13 = vpop.eup %2653 }
 0x1bb   : > { %v505_v15 = vmul.f32 %v2654_v13, %v497_v4  ;;  %v2264_v4 = vcombine.low %v587_v3, %v587_v3 }
 0x1bd   : > { %v512_v17 = vmul.f32 %v2254_v14, %v505_v15  ;;  %v821_v6 = vrot.slane %v2264_v4, 2 }
 0x1bf   : > { %v519_v18 = vadd.f32 %v2255_v16, %v512_v17  ;;  %v827_v7 = vsel %vm825_vm5, %v821_v6, 0 }
 0x1c1   : > { %v524_v19 = vpack.c.bf16 %v519_v18, %v519_v18 }
 0x1c3   : > { %2369 = vmatmul.mubr.msk.bf16.vlgmr.msra.gmra.mrb[0].mxu1 %vm491_vm0, %v524_v19 }
 0x1c4   : > { %2374 = vmatprep.mubr.msk.bf16.mxu1 %vm2890_vm1, %v2889_v8 }
 0x296   : > { %v581_v21 = vpop.f32.mrb[0].mxu1 }
 0x297   : > { %v582_v22 = vadd.f32 %v2256_v20, %v581_v21  ;;  %v2370_v23 = vpop.f32.mrb[1].mxu1 }
 0x298   : > { %v584_v24 = vpop.f32.mrb[2].mxu1 }
 0x299   : > { %v3188_v25 = vpack.c.bf16 %v582_v22, %v582_v22  ;;  %v2371_v26 = vpop.f32.mrb[3].mxu1 }
 0x29b   : > { %706 = vrot.lane.b32.xlu0 %v3188_v25, %s2891_s17  ;;  %593 = vrot.lane.b32.xlu1 %v3188_v25, %s2892_s19  ;;  %s2902_s17 = smov 112   ;;  %s2903_s19 = smov 52  }
 0x29f   : > { %708 = vrot.lane.b32.xlu1 %v3188_v25, %s2893_s20  ;;  %s2904_s20 = smov 48  }
 0x30d   : > { %v594_v27 = vpop.permute.xlu1 %593  ;;  %v707_v31 = vpop.permute.xlu0 %706 }
 0x30e   : > { %v600_v28 = vsel %vm595_vm2, %v594_v27, 0 }
 0x30f   : > { %2373 = vmatpush3.bf16.xpose.msra.mxu1 %v600_v28 }
 0x310   : > { %2384 = vmatprep.subr.bf16.mxu1 %v2889_v8 }
 0x311   : > { %v709_v29 = vpop.permute.xlu1 %708 }
 0x312   : > { %v714_v30 = vsel %vm595_vm2, %v709_v29, 0 }
 0x316   : > { %2375 = vmatmul.mubr.msk.bf16.vlgmr.msra.gmra.mrb[4].mxu1 %vm595_vm2, %v3188_v25 }
 0x317   : > { %2385 = vmatpush3.bf16.xpose.msra.mxu1 %v714_v30  ;;  %2386 = vmatprep.mubr.msk.bf16.mxu1 %vm2890_vm1, %v2889_v8 }
 0x318   : > { %2396 = vmatprep.subr.bf16.mxu1 %v2889_v8 }
 0x31e   : > { %2387 = vmatmul.mubr.msk.bf16.vlgmr.msra.gmra.mrb[8].mxu1 %vm595_vm2, %v707_v31 }
 0x31f   : > { %2398 = vmatprep.mubr.msk.bf16.mxu1 %vm2890_vm1, %v2889_v8  ;;  %2397 = vmatpush3.bf16.msra.mxu1 %v827_v7 }
 0x320   : > { %2408 = vmatprep.subr.bf16.mxu1 %v2889_v8 }
 0x3e9   : > { %v636_v32 = vpop.f32.mrb[4].mxu1 }
 0x3ea   : > { %v642_v33 = vmul.f32 0.17677669, %v636_v32  ;;  %v2376_v34 = vpop.f32.mrb[5].mxu1 }
 0x3eb   : > { %v639_v35 = vpop.f32.mrb[6].mxu1 }
 0x3ec   : > { %v2377_v36 = vpop.f32.mrb[7].mxu1  ;;  %v644_v37 = vsel %vm643_vm3, %v642_v33, -inf }
 0x3ed   : > { %645 = vmax.xlane.f32.xlu1 %v644_v37 }
 0x3f1   : > { %v750_v38 = vpop.f32.mrb[8].mxu1 }
 0x3f2   : > { %v756_v39 = vmul.f32 0.17677669, %v750_v38  ;;  %v2388_v40 = vpop.f32.mrb[9].mxu1 }
 0x3f3   : > { %v753_v41 = vpop.f32.mrb[10].mxu1 }
 0x3f4   : > { %v2389_v42 = vpop.f32.mrb[11].mxu1  ;;  %v757_v43 = vsel %vm643_vm3, %v756_v39, -inf }
 0x3f5   : > { %758 = vmax.xlane.f32.xlu0 %v757_v43 }
 0x40b   : > { %769 = vrot.lane.b32.xlu0 %v3188_v25, %s2894_s30  ;;  %s2905_s30 = smov 108  }
 0x47a   : > { %v646_v44 = vpop.xlane.xlu1 %645 }
 0x47b   : > { %v647_v45 = vsub.f32 %v642_v33, %v646_v44 }
 0x47d   : > { %v648_v46 = vmul.f32 1.442695, %v647_v45 }
 0x47f   : > { %2655 = vpow2.f32 %v648_v46 }
 0x482   : > { %v759_v47 = vpop.xlane.xlu0 %758 }
 0x483   : > { %v760_v48 = vsub.f32 %v756_v39, %v759_v47 }
 0x485   : > { %v761_v49 = vmul.f32 1.442695, %v760_v48 }
 0x486   : > { %v770_v60 = vpop.permute.xlu0 %769 }
 0x487   : > { %2657 = vpow2.f32 %v761_v49  ;;  %v775_v62 = vsel %vm661_vm4, %v770_v60, 0 }
 0x489   : > { %v2656_v50 = vpop.eup %2655 }
 0x48a   : > { %v650_v51 = vsel %vm643_vm3, %v2656_v50, 0.0 }
 0x48b   : > { %651 = vadd.xlane.f32.xlu1 %v650_v51 }
 0x491   : > { %v2658_v52 = vpop.eup %2657 }
 0x492   : > { %v763_v53 = vsel %vm643_vm3, %v2658_v52, 0.0 }
 0x493   : > { %764 = vadd.xlane.f32.xlu1 %v763_v53 }
 0x4a4   : > { %656 = vrot.lane.b32.xlu1 %v3188_v25, %s2895_s23  ;;  %s2906_s23 = smov 76  }
 0x4a8   : > { %917 = vrot.lane.b32.xlu1 %v3188_v25, %s2896_s25 }
 0x4ac   : > { %915 = vrot.lane.b32.xlu1 %v3188_v25, %s2897_s21 }
 0x518   : > { %v652_v54 = vpop.xlane.xlu1 %651 }
 0x519   : > { %2659 = vrcp.f32 %v652_v54 }
 0x520   : > { %v765_v55 = vpop.xlane.xlu1 %764 }
 0x521   : > { %2661 = vrcp.f32 %v765_v55 }
 0x523   : > { %v2660_v56 = vpop.eup %2659 }
 0x524   : > { %v657_v57 = vpop.permute.xlu1 %656  ;;  %v654_v58 = vmul.f32 %v2660_v56, %v2656_v50 }
 0x525   : > { %v663_v59 = vsel %vm661_vm4, %v657_v57, 0 }
 0x526   : > { %2379 = vmatpush3.bf16.msra.mxu0 %v663_v59  ;;  %v655_v61 = vpack.c.bf16 %v654_v58, %v654_v58 }
 0x527   : > { %2390 = vmatprep.subr.bf16.mxu0 %v2889_v8 }
 0x528   : > { %v918_v14 = vpop.permute.xlu1 %917 }
 0x529   : > { %2381 = vmatmul.mubr.msk.bf16.vlgmr.msra.gmra.mrb[0].mxu0 %vm643_vm3, %v655_v61  ;;  %v923_v19 = vsel %vm595_vm2, %v918_v14, 0 }
 0x52a   : > { %2391 = vmatpush3.bf16.msra.mxu0 %v775_v62  ;;  %2392 = vmatprep.mubr.msk.bf16.mxu0 %vm2890_vm1, %v2889_v8 }
 0x52b   : > { %v2662_v63 = vpop.eup %2661  ;;  %2402 = vmatprep.subr.bf16.mxu0 %v2889_v8 }
 0x52c   : > { %v767_v1 = vmul.f32 %v2662_v63, %v2658_v52  ;;  %v916_v21 = vpop.permute.xlu1 %915  ;;  %v588_v52 = vld [vmem:[%s3455_s5 + $0x4] sm:$0xf] }
 0x52d   : > { %v1031_v53 = vsel %vm825_vm5, %v588_v52, 0 }
 0x52e   : > { %v768_v2 = vpack.c.bf16 %v767_v1, %v767_v1 }
 0x531   : > { %2393 = vmatmul.mubr.msk.bf16.vlgmr.msra.gmra.mrb[4].mxu0 %vm643_vm3, %v768_v2 }
 0x532   : > { %2404 = vmatprep.mubr.msk.bf16.mxu0 %vm2890_vm1, %v2889_v8  ;;  %2403 = vmatpush3.bf16.msra.mxu0 %v873_v5 }
 0x533   : > { %2414 = vmatprep.subr.bf16.mxu0 %v2889_v8 }
 0x5fc   : > { %v699_v9 = vpop.f32.mrb[0].mxu0 }
 0x5fd   : > { %v705_v10 = vpack.c.bf16 %v699_v9, %v699_v9  ;;  %v2382_v11 = vpop.f32.mrb[1].mxu0 }
 0x5fe   : > { %v702_v12 = vpop.f32.mrb[2].mxu0 }
 0x5ff   : > { %v2383_v13 = vpop.f32.mrb[3].mxu0  ;;  %2405 = vmatmul.mubr.msk.bf16.vlgmr.msra.gmra.mrb[8].mxu0 %vm595_vm2, %v705_v10 }
 0x600   : > { %2416 = vmatprep.mubr.msk.bf16.mxu0 %vm2890_vm1, %v2889_v8 }
 0x604   : > { %v811_v15 = vpop.f32.mrb[4].mxu0 }
 0x605   : > { %v817_v16 = vpack.c.bf16 %v811_v15, %v811_v15  ;;  %v2394_v17 = vpop.f32.mrb[5].mxu0 }
 0x606   : > { %v814_v18 = vpop.f32.mrb[6].mxu0 }
 0x607   : > { %v2395_v20 = vpop.f32.mrb[7].mxu0  ;;  %2399 = vmatmul.mubr.msk.bf16.vlgmr.msra.gmra.mrb[12].mxu1 %vm595_vm2, %v817_v16 }
 0x608   : > { %2409 = vmatpush3.bf16.xpose.msra.mxu1 %v923_v19  ;;  %2410 = vmatprep.mubr.msk.bf16.mxu1 %vm2890_vm1, %v2889_v8 }
 0x609   : > { %2420 = vmatprep.subr.bf16.mxu1 %v2889_v8 }
 0x60f   : > { %2411 = vmatmul.mubr.msk.bf16.vlgmr.msra.gmra.mrb[16].mxu1 %vm595_vm2, %v916_v21 }
 0x610   : > { %2422 = vmatprep.mubr.msk.bf16.mxu1 %vm2890_vm1, %v2889_v8  ;;  %2421 = vmatpush3.bf16.msra.mxu1 %v1031_v53 }
 0x611   : > { %2432 = vmatprep.subr.bf16.mxu1 %v2889_v8 }
 0x6d2   : > { %v909_v22 = vpop.f32.mrb[8].mxu0 }
 0x6d3   : > { %v2406_v23 = vpop.f32.mrb[9].mxu0 }
 0x6d4   : > { %v912_v24 = vpop.f32.mrb[10].mxu0 }
 0x6d5   : > { %v2407_v26 = vpop.f32.mrb[11].mxu0 }
 0x6da   : > { %v863_v27 = vpop.f32.mrb[12].mxu1 }
 0x6db   : > { %v3240_v28 = vadd.f32 %v909_v22, %v863_v27  ;;  %v2400_v29 = vpop.f32.mrb[13].mxu1  ;;  %v2272_v22 = vcombine.low %v588_v52, %v588_v52 }
 0x6dc   : > { %v866_v30 = vpop.f32.mrb[14].mxu1 }
 0x6dd   : > { %v2401_v31 = vpop.f32.mrb[15].mxu1  ;;  %v1189_v23 = vrot.slane %v2272_v22, 2 }
 0x6df   : > { %v1194_v24 = vsel %vm825_vm5, %v1189_v23, 0 }
 0x6e2   : > { %v959_v32 = vpop.f32.mrb[16].mxu1 }
 0x6e3   : > { %v965_v33 = vmul.f32 0.17677669, %v959_v32  ;;  %v2412_v34 = vpop.f32.mrb[17].mxu1 }
 0x6e4   : > { %v962_v35 = vpop.f32.mrb[18].mxu1 }
 0x6e5   : > { %v2413_v36 = vpop.f32.mrb[19].mxu1  ;;  %v966_v37 = vsel %vm643_vm3, %v965_v33, -inf }
 0x6e6   : > { %967 = vmax.xlane.f32.xlu1 %v966_v37 }
 0x6f7   : > { %978 = vrot.lane.b32.xlu1 %v3188_v25, %s2898_s14  ;;  %s2909_s14 = smov 44  }
 0x6fb   : > { %1074 = vrot.lane.b32.xlu1 %v3188_v25, %s2899_s22  ;;  %s2910_s22 = smov 40  }
 0x773   : > { %v968_v38 = vpop.xlane.xlu1 %967 }
 0x774   : > { %v969_v39 = vsub.f32 %v965_v33, %v968_v38 }
 0x776   : > { %v970_v40 = vmul.f32 1.442695, %v969_v39 }
 0x777   : > { %v979_v41 = vpop.permute.xlu1 %978 }
 0x778   : > { %2663 = vpow2.f32 %v970_v40  ;;  %v984_v42 = vsel %vm661_vm4, %v979_v41, 0 }
 0x779   : > { %2415 = vmatpush3.bf16.msra.mxu0 %v984_v42 }
 0x77a   : > { %2426 = vmatprep.subr.bf16.mxu0 %v2889_v8 }
 0x77b   : > { %v1075_v51 = vpop.permute.xlu1 %1074 }
 0x782   : > { %v2664_v43 = vpop.eup %2663 }
 0x783   : > { %v972_v44 = vsel %vm643_vm3, %v2664_v43, 0.0 }
 0x784   : > { %973 = vadd.xlane.f32.xlu0 %v972_v44 }
 0x79a   : > { %1076 = vrot.lane.b32.xlu0 %v3188_v25, %s2900_s24  ;;  %s2911_s24 = smov 100  }
 0x811   : > { %v974_v45 = vpop.xlane.xlu0 %973 }
 0x812   : > { %2665 = vrcp.f32 %v974_v45 }
 0x815   : > { %v1077_v48 = vpop.permute.xlu0 %1076 }
 0x816   : > { %v1082_v50 = vsel %vm595_vm2, %v1077_v48, 0 }
 0x81c   : > { %v2666_v46 = vpop.eup %2665 }
 0x81d   : > { %v976_v47 = vmul.f32 %v2666_v46, %v2664_v43 }
 0x81f   : > { %v977_v49 = vpack.c.bf16 %v976_v47, %v976_v47 }
 0x821   : > { %2417 = vmatmul.mubr.msk.bf16.vlgmr.msra.gmra.mrb[12].mxu0 %vm643_vm3, %v977_v49 }
 0x822   : > { %2427 = vmatpush3.bf16.xpose.msra.mxu0 %v1082_v50  ;;  %2428 = vmatprep.mubr.msk.bf16.mxu0 %vm2890_vm1, %v2889_v8 }
 0x823   : > { %2438 = vmatprep.subr.bf16.mxu0 %v2889_v8 }
 0x829   : > { %2429 = vmatmul.mubr.msk.bf16.vlgmr.msra.gmra.mrb[16].mxu0 %vm595_vm2, %v1075_v51 }
 0x82a   : > { %2440 = vmatprep.mubr.msk.bf16.mxu0 %vm2890_vm1, %v2889_v8  ;;  %2439 = vmatpush3.bf16.msra.mxu0 %v1194_v24 }
 0x82b   : > { %2450 = vmatprep.subr.bf16.mxu0 %v2889_v8 }
 0x8f4   : > { %v1020_v54 = vpop.f32.mrb[12].mxu0 }
 0x8f5   : > { %v1026_v55 = vpack.c.bf16 %v1020_v54, %v1020_v54  ;;  %v2418_v56 = vpop.f32.mrb[13].mxu0 }
 0x8f6   : > { %v1023_v57 = vpop.f32.mrb[14].mxu0  ;;  %v589_v56 = vld [vmem:[%s3455_s5 + $0x8] sm:$0xf] }
 0x8f7   : > { %v2419_v58 = vpop.f32.mrb[15].mxu0  ;;  %2423 = vmatmul.mubr.msk.bf16.vlgmr.msra.gmra.mrb[20].mxu1 %vm595_vm2, %v1026_v55  ;;  %v1353_v57 = vsel %vm825_vm5, %v589_v56, 0 }
 0x8f8   : > { %2434 = vmatprep.mubr.msk.bf16.mxu1 %vm2890_vm1, %v2889_v8 }
 0x8fc   : > { %v1118_v59 = vpop.f32.mrb[16].mxu0 }
 0x8fd   : > { %v1124_v60 = vmul.f32 0.17677669, %v1118_v59  ;;  %v2430_v61 = vpop.f32.mrb[17].mxu0 }
 0x8fe   : > { %v1121_v62 = vpop.f32.mrb[18].mxu0 }
 0x8ff   : > { %v2431_v63 = vpop.f32.mrb[19].mxu0  ;;  %v1125_v1 = vsel %vm643_vm3, %v1124_v60, -inf }
 0x900   : > { %1126 = vmax.xlane.f32.xlu1 %v1125_v1 }
 0x911   : > { %1239 = vrot.lane.b32.xlu1 %v3188_v25, %s2901_s28 }
 0x915   : > { %1237 = vrot.lane.b32.xlu1 %v3188_v25, %s2902_s17  ;;  %s2913_s17 = smov 36  }
 0x98d   : > { %v1127_v2 = vpop.xlane.xlu1 %1126 }
 0x98e   : > { %v1128_v3 = vsub.f32 %v1124_v60, %v1127_v2 }
 0x990   : > { %v1129_v4 = vmul.f32 1.442695, %v1128_v3 }
 0x991   : > { %v1240_v18 = vpop.permute.xlu1 %1239 }
 0x992   : > { %2667 = vpow2.f32 %v1129_v4  ;;  %v1245_v20 = vsel %vm595_vm2, %v1240_v18, 0 }
 0x995   : > { %v1238_v21 = vpop.permute.xlu1 %1237 }
 0x99c   : > { %v2668_v5 = vpop.eup %2667 }
 0x99d   : > { %v1131_v6 = vsel %vm643_vm3, %v2668_v5, 0.0 }
 0x99e   : > { %1132 = vadd.xlane.f32.xlu0 %v1131_v6 }
 0x9b4   : > { %1137 = vrot.lane.b32.xlu0 %v3188_v25, %s2903_s19 }
 0x9ca   : > { %v1067_v7 = vpop.f32.mrb[20].mxu1 }
 0x9cb   : > { %v1073_v9 = vadd.f32 %v1067_v7, %v3240_v28  ;;  %v2424_v10 = vpop.f32.mrb[21].mxu1 }
 0x9cc   : > { %v1070_v11 = vpop.f32.mrb[22].mxu1 }
 0x9cd   : > { %v2425_v12 = vpop.f32.mrb[23].mxu1 }
 0xa2b   : > { %v1133_v13 = vpop.xlane.xlu0 %1132 }
 0xa2c   : > { %2669 = vrcp.f32 %v1133_v13 }
 0xa2f   : > { %v1138_v14 = vpop.permute.xlu0 %1137 }
 0xa30   : > { %v1143_v15 = vsel %vm661_vm4, %v1138_v14, 0 }
 0xa31   : > { %2433 = vmatpush3.bf16.msra.mxu1 %v1143_v15 }
 0xa32   : > { %2444 = vmatprep.subr.bf16.mxu1 %v2889_v8 }
 0xa36   : > { %v2670_v16 = vpop.eup %2669 }
 0xa37   : > { %v1135_v17 = vmul.f32 %v2670_v16, %v2668_v5 }
 0xa39   : > { %v1136_v19 = vpack.c.bf16 %v1135_v17, %v1135_v17 }
 0xa3b   : > { %2435 = vmatmul.mubr.msk.bf16.vlgmr.msra.gmra.mrb[24].mxu1 %vm643_vm3, %v1136_v19 }
 0xa3c   : > { %2445 = vmatpush3.bf16.xpose.msra.mxu1 %v1245_v20  ;;  %2446 = vmatprep.mubr.msk.bf16.mxu1 %vm2890_vm1, %v2889_v8 }
 0xa3d   : > { %2456 = vmatprep.subr.bf16.mxu1 %v2889_v8 }
 0xa43   : > { %2447 = vmatmul.mubr.msk.bf16.vlgmr.msra.gmra.mrb[28].mxu1 %vm595_vm2, %v1238_v21 }
 0xa44   : > { %2458 = vmatprep.mubr.msk.bf16.mxu1 %vm2890_vm1, %v2889_v8  ;;  %2457 = vmatpush3.bf16.msra.mxu1 %v1353_v57 }
 0xa45   : > { %2468 = vmatprep.subr.bf16.mxu1 %v2889_v8 }
 0xb0e   : > { %v1179_v26 = vpop.f32.mrb[24].mxu1 }
 0xb0f   : > { %v1185_v27 = vpack.c.bf16 %v1179_v26, %v1179_v26  ;;  %v2436_v28 = vpop.f32.mrb[25].mxu1 }
 0xb10   : > { %v1182_v29 = vpop.f32.mrb[26].mxu1 }
 0xb11   : > { %v2437_v30 = vpop.f32.mrb[27].mxu1  ;;  %2441 = vmatmul.mubr.msk.bf16.vlgmr.msra.gmra.mrb[20].mxu0 %vm595_vm2, %v1185_v27  ;;  %v2279_v27 = vcombine.low %v589_v56, %v589_v56 }
 0xb12   : > { %2452 = vmatprep.mubr.msk.bf16.mxu0 %vm2890_vm1, %v2889_v8 }
 0xb13   : > { %v1511_v28 = vrot.slane %v2279_v27, 2 }
 0xb15   : > { %v1516_v29 = vsel %vm825_vm5, %v1511_v28, 0 }
 0xb16   : > { %v1281_v31 = vpop.f32.mrb[28].mxu1 }
 0xb17   : > { %v1287_v32 = vmul.f32 0.17677669, %v1281_v31  ;;  %v2448_v33 = vpop.f32.mrb[29].mxu1 }
 0xb18   : > { %v1284_v34 = vpop.f32.mrb[30].mxu1 }
 0xb19   : > { %v2449_v35 = vpop.f32.mrb[31].mxu1  ;;  %v1288_v36 = vsel %vm643_vm3, %v1287_v32, -inf }
 0xb1a   : > { %1289 = vmax.xlane.f32.xlu0 %v1288_v36 }
 0xb30   : > { %1300 = vrot.lane.b32.xlu0 %v3188_v25, %s2904_s20  ;;  %s480_s20 = sand.u32 1, %s2875_s26  }
 0xb34   : > { %1396 = vrot.lane.b32.xlu0 %v3188_v25, %s2905_s30  ;;  %s2252_s30 = sshll.u32 %s480_s20, 3 }
 0xb35   : > { %s482_s25 = scalar_lea.vmem [#allocation10], %s2252_s30 }
 0xb36   : > { %s2140_s21 = sshll.u32 %s482_s25, 4  ;;  %s3409_s21 = int_to_ptr.vmem [resolvable:$true] %s2140_s21 }
 0xba7   : > { %v1290_v37 = vpop.xlane.xlu0 %1289 }
 0xba8   : > { %v1291_v38 = vsub.f32 %v1287_v32, %v1290_v37 }
 0xbaa   : > { %v1292_v39 = vmul.f32 1.442695, %v1291_v38 }
 0xbab   : > { %v1301_v40 = vpop.permute.xlu0 %1300 }
 0xbac   : > { %2671 = vpow2.f32 %v1292_v39  ;;  %v1306_v41 = vsel %vm661_vm4, %v1301_v40, 0 }
 0xbad   : > { %2451 = vmatpush3.bf16.msra.mxu0 %v1306_v41 }
 0xbae   : > { %2462 = vmatprep.subr.bf16.mxu0 %v2889_v8 }
 0xbaf   : > { %v1397_v55 = vpop.permute.xlu0 %1396 }
 0xbb6   : > { %v2672_v42 = vpop.eup %2671 }
 0xbb7   : > { %v1294_v43 = vsel %vm643_vm3, %v2672_v42, 0.0 }
 0xbb8   : > { %1295 = vadd.xlane.f32.xlu1 %v1294_v43 }
 0xbc9   : > { %1398 = vrot.lane.b32.xlu1 %v3188_v25, %s2906_s23  ;;  %s2302_s23 = sshll.u32 %s3006_s29, 7  ;;  %s2914_s29 = smov [#allocation10]  }
 0xbca   : > { %s2813_s16 = sshll.u32 %s2914_s29, 4  ;;  %s2814_s16 = int_to_ptr.vmem [resolvable:$false] %s2813_s16 }
 0xbcb   : > { %s2815_s28 = scalar_lea.vmem %s2814_s16, 256  ;;  %p2816_p8 = scmp.lt.s32.totalorder %s3409_s21, %s2814_s16 }
 0xbe4   : > { %v1230_v44 = vpop.f32.mrb[20].mxu0 }
 0xbe5   : > { %v1236_v45 = vadd.f32 %v1230_v44, %v1073_v9  ;;  %v2442_v46 = vpop.f32.mrb[21].mxu0 }
 0xbe6   : > { %v1233_v47 = vpop.f32.mrb[22].mxu0 }
 0xbe7   : > { %v2443_v48 = vpop.f32.mrb[23].mxu0 }
 0xc45   : > { %v1296_v49 = vpop.xlane.xlu1 %1295 }
 0xc46   : > { %2673 = vrcp.f32 %v1296_v49 }
 0xc49   : > { %v1399_v52 = vpop.permute.xlu1 %1398 }
 0xc4a   : > { %v1404_v54 = vsel %vm595_vm2, %v1399_v52, 0 }
 0xc50   : > { %v2674_v50 = vpop.eup %2673 }
 0xc51   : > { %v1298_v51 = vmul.f32 %v2674_v50, %v2672_v42 }
 0xc53   : > { %v1299_v53 = vpack.c.bf16 %v1298_v51, %v1298_v51 }
 0xc55   : > { %2453 = vmatmul.mubr.msk.bf16.vlgmr.msra.gmra.mrb[24].mxu0 %vm643_vm3, %v1299_v53 }
 0xc56   : > { %2463 = vmatpush3.bf16.xpose.msra.mxu0 %v1404_v54  ;;  %2464 = vmatprep.mubr.msk.bf16.mxu0 %vm2890_vm1, %v2889_v8 }
 0xc57   : > { %2474 = vmatprep.subr.bf16.mxu0 %v2889_v8 }
 0xc5d   : > { %2465 = vmatmul.mubr.msk.bf16.vlgmr.msra.gmra.mrb[28].mxu0 %vm595_vm2, %v1397_v55 }
 0xc5e   : > { %2476 = vmatprep.mubr.msk.bf16.mxu0 %vm2890_vm1, %v2889_v8  ;;  %2475 = vmatpush3.bf16.msra.mxu0 %v1516_v29 }
 0xc5f   : > { %2486 = vmatprep.subr.bf16.mxu0 %v2889_v8 }
 0xd28   : > { %v1342_v58 = vpop.f32.mrb[24].mxu0 }
 0xd29   : > { %v1348_v59 = vpack.c.bf16 %v1342_v58, %v1342_v58  ;;  %v2454_v60 = vpop.f32.mrb[25].mxu0 }
 0xd2a   : > { %v1345_v61 = vpop.f32.mrb[26].mxu0  ;;  %v590_v60 = vld [vmem:[%s3455_s5 + $0xc] sm:$0xf] }
 0xd2b   : > { %v2455_v62 = vpop.f32.mrb[27].mxu0  ;;  %2459 = vmatmul.mubr.msk.bf16.vlgmr.msra.gmra.mrb[32].mxu1 %vm595_vm2, %v1348_v59  ;;  %v1675_v61 = vsel %vm825_vm5, %v590_v60, 0 }
 0xd2c   : > { %2470 = vmatprep.mubr.msk.bf16.mxu1 %vm2890_vm1, %v2889_v8 }
 0xd30   : > { %v1440_v63 = vpop.f32.mrb[28].mxu0 }
 0xd31   : > { %v1446_v1 = vmul.f32 0.17677669, %v1440_v63  ;;  %v2466_v2 = vpop.f32.mrb[29].mxu0 }
 0xd32   : > { %v1443_v3 = vpop.f32.mrb[30].mxu0 }
 0xd33   : > { %v2467_v4 = vpop.f32.mrb[31].mxu0  ;;  %v1447_v5 = vsel %vm643_vm3, %v1446_v1, -inf }
 0xd34   : > { %1448 = vmax.xlane.f32.xlu1 %v1447_v5 }
 0xd45   : > { %1561 = vrot.lane.b32.xlu1 %v3188_v25, %s2907_s15 }
 0xd49   : > { %1559 = vrot.lane.b32.xlu1 %v3188_v25, %s2908_s27 }
 0xdc1   : > { %v1449_v6 = vpop.xlane.xlu1 %1448 }
 0xdc2   : > { %v1450_v7 = vsub.f32 %v1446_v1, %v1449_v6 }
 0xdc4   : > { %v1451_v9 = vmul.f32 1.442695, %v1450_v7 }
 0xdc5   : > { %v1562_v22 = vpop.permute.xlu1 %1561 }
 0xdc6   : > { %2675 = vpow2.f32 %v1451_v9  ;;  %v1567_v24 = vsel %vm595_vm2, %v1562_v22, 0 }
 0xdc9   : > { %v1560_v26 = vpop.permute.xlu1 %1559 }
 0xdd0   : > { %v2676_v10 = vpop.eup %2675 }
 0xdd1   : > { %v1453_v11 = vsel %vm643_vm3, %v2676_v10, 0.0 }
 0xdd2   : > { %1454 = vadd.xlane.f32.xlu0 %v1453_v11 }
 0xde8   : > { %1459 = vrot.lane.b32.xlu0 %v3188_v25, %s2909_s14  ;;  %s3493_s14 = sld [smem:[#allocation21_spill]] }
 0xdfe   : > { %v1389_v12 = vpop.f32.mrb[32].mxu1 }
 0xdff   : > { %v1395_v13 = vadd.f32 %v1389_v12, %v1236_v45  ;;  %v2460_v14 = vpop.f32.mrb[33].mxu1 }
 0xe00   : > { %v1392_v15 = vpop.f32.mrb[34].mxu1 }
 0xe01   : > { %v2461_v16 = vpop.f32.mrb[35].mxu1 }
 0xe02   : > { %v2286_v16 = vcombine.low %v590_v60, %v590_v60  ;;  %v2649_v60 = vld [vmem:[%s3461_s11] sm:$0xff]  }
 0xe5f   : > { %v1455_v17 = vpop.xlane.xlu0 %1454 }
 0xe60   : > { %2677 = vrcp.f32 %v1455_v17  ;;  %v1833_v17 = vrot.slane %v2286_v16, 2 }
 0xe63   : > { %v1460_v18 = vpop.permute.xlu0 %1459 }
 0xe64   : > { %v1465_v19 = vsel %vm661_vm4, %v1460_v18, 0  ;;  %v1838_v18 = vsel %vm825_vm5, %v1833_v17, 0 }
 0xe65   : > { %2469 = vmatpush3.bf16.msra.mxu1 %v1465_v19 }
 0xe66   : > { %2480 = vmatprep.subr.bf16.mxu1 %v2889_v8 }
 0xe6a   : > { %v2678_v20 = vpop.eup %2677 }
 0xe6b   : > { %v1457_v21 = vmul.f32 %v2678_v20, %v2676_v10 }
 0xe6d   : > { %v1458_v23 = vpack.c.bf16 %v1457_v21, %v1457_v21 }
 0xe6f   : > { %2471 = vmatmul.mubr.msk.bf16.vlgmr.msra.gmra.mrb[36].mxu1 %vm643_vm3, %v1458_v23 }
 0xe70   : > { %2481 = vmatpush3.bf16.xpose.msra.mxu1 %v1567_v24  ;;  %2482 = vmatprep.mubr.msk.bf16.mxu1 %vm2890_vm1, %v2889_v8 }
 0xe71   : > { %2492 = vmatprep.subr.bf16.mxu1 %v2889_v8 }
 0xe77   : > { %2483 = vmatmul.mubr.msk.bf16.vlgmr.msra.gmra.mrb[40].mxu1 %vm595_vm2, %v1560_v26 }
 0xe78   : > { %2494 = vmatprep.mubr.msk.bf16.mxu1 %vm2890_vm1, %v2889_v8  ;;  %2493 = vmatpush3.bf16.msra.mxu1 %v1675_v61  ;;  %v2650_v61 = vld [vmem:[%s3461_s11 + $0x8] sm:$0xff]  }
 0xe79   : > { %2504 = vmatprep.subr.bf16.mxu1 %v2889_v8 }
 0xf42   : > { %v1501_v30 = vpop.f32.mrb[36].mxu1 }
 0xf43   : > { %v1507_v31 = vpack.c.bf16 %v1501_v30, %v1501_v30  ;;  %v2472_v32 = vpop.f32.mrb[37].mxu1 }
 0xf44   : > { %v1504_v33 = vpop.f32.mrb[38].mxu1 }
 0xf45   : > { %v2473_v34 = vpop.f32.mrb[39].mxu1  ;;  %2477 = vmatmul.mubr.msk.bf16.vlgmr.msra.gmra.mrb[32].mxu0 %vm595_vm2, %v1507_v31 }
 0xf46   : > { %2488 = vmatprep.mubr.msk.bf16.mxu0 %vm2890_vm1, %v2889_v8 }
 0xf4a   : > { %v1603_v35 = vpop.f32.mrb[40].mxu1 }
 0xf4b   : > { %v1609_v36 = vmul.f32 0.17677669, %v1603_v35  ;;  %v2484_v37 = vpop.f32.mrb[41].mxu1 }
 0xf4c   : > { %v1606_v38 = vpop.f32.mrb[42].mxu1 }
 0xf4d   : > { %v2485_v39 = vpop.f32.mrb[43].mxu1  ;;  %v1610_v40 = vsel %vm643_vm3, %v1609_v36, -inf }
 0xf4e   : > { %1611 = vmax.xlane.f32.xlu0 %v1610_v40 }
 0xf64   : > { %1622 = vrot.lane.b32.xlu0 %v3188_v25, %s2910_s22  ;;  %s3407_s22 = scalar_lea.hbm %s3493_s14, %s2302_s23 }
 0xf68   : > { %1718 = vrot.lane.b32.xlu0 %v3188_v25, %s2911_s24  ;;  %s2127_s24 = scalar_lea.sflag [#allocation4], %s480_s20 }
 0xfdb   : > { %v1612_v41 = vpop.xlane.xlu0 %1611 }
 0xfdc   : > { %v1613_v42 = vsub.f32 %v1609_v36, %v1612_v41  ;;  %v2288_v36 = vld [vmem:[#allocation5] ss:$0 sm:$0xff] }
 0xfde   : > { %v1614_v43 = vmul.f32 1.442695, %v1613_v42 }
 0xfdf   : > { %v1623_v44 = vpop.permute.xlu0 %1622 }
 0xfe0   : > { %2679 = vpow2.f32 %v1614_v43  ;;  %v1628_v45 = vsel %vm661_vm4, %v1623_v44, 0 }
 0xfe1   : > { %2487 = vmatpush3.bf16.msra.mxu0 %v1628_v45 }
 0xfe2   : > { %2498 = vmatprep.subr.bf16.mxu0 %v2889_v8 }
 0xfe3   : > { %v1719_v59 = vpop.permute.xlu0 %1718 }
 0xfea   : > { %v2680_v46 = vpop.eup %2679 }
 0xfeb   : > { %v1616_v47 = vsel %vm643_vm3, %v2680_v46, 0.0 }
 0xfec   : > { %1617 = vadd.xlane.f32.xlu1 %v1616_v47 }
 0xffd   : > { %1720 = vrot.lane.b32.xlu1 %v3188_v25, %s2912_s13  ;;  %s2809_s13 = scalar_lea.vmem %s3409_s21, 128 }
 0xffe   : > { %p2810_p2 = scmp.ne.s32.totalorder %s3409_s21, %s2809_s13  ;;  %p2817_p11 = scmp.lt.s32.totalorder %s2815_s28, %s2809_s13 }
0x1000   : > { %p2811_p4 = pnand %p2810_p2, %p3494_p3  ;;  %p2818_p13 = por %p2817_p11, %p2816_p8 }
0x1002   : > { %p2812_p7 = pneg %p2811_p4 }
0x1004   : > { %p2819_p1 = pnand %p2818_p13, %p2812_p7 }
0x1018   : > { %v1552_v48 = vpop.f32.mrb[32].mxu0 }
0x1019   : > { %v1558_v49 = vadd.f32 %v1552_v48, %v1395_v13  ;;  %v2478_v50 = vpop.f32.mrb[33].mxu0 }
0x101a   : > { %v1555_v51 = vpop.f32.mrb[34].mxu0 }
0x101b   : > { %v2479_v52 = vpop.f32.mrb[35].mxu0 }
0x1079   : > { %v1618_v53 = vpop.xlane.xlu1 %1617 }
0x107a   : > { %2681 = vrcp.f32 %v1618_v53 }
0x107d   : > { %v1721_v56 = vpop.permute.xlu1 %1720 }
0x107e   : > { %v1726_v58 = vsel %vm595_vm2, %v1721_v56, 0  ;;  %v2290_v56 = vld [vmem:[#allocation8] ss:$0 sm:$0xff] }
0x1084   : > { %v2682_v54 = vpop.eup %2681 }
0x1085   : > { %v1620_v55 = vmul.f32 %v2682_v54, %v2680_v46  ;;  %v2289_v54 = vld [vmem:[#allocation7] ss:$0 sm:$0xff] }
0x1087   : > { %v1621_v57 = vpack.c.bf16 %v1620_v55, %v1620_v55 }
0x1089   : > { %2489 = vmatmul.mubr.msk.bf16.vlgmr.msra.gmra.mrb[36].mxu0 %vm643_vm3, %v1621_v57 }
0x108a   : > { %2499 = vmatpush3.bf16.xpose.msra.mxu0 %v1726_v58  ;;  %2500 = vmatprep.mubr.msk.bf16.mxu0 %vm2890_vm1, %v2889_v8 }
0x108b   : > { %2510 = vmatprep.subr.bf16.mxu0 %v2889_v8 }
0x1091   : > { %2501 = vmatmul.mubr.msk.bf16.vlgmr.msra.gmra.mrb[40].mxu0 %vm595_vm2, %v1719_v59 }
0x1092   : > { %2512 = vmatprep.mubr.msk.bf16.mxu0 %vm2890_vm1, %v2889_v8  ;;  %2511 = vmatpush3.bf16.msra.mxu0 %v1838_v18 }
0x1093   : > { %2524 = vmatprep.subr.bf16.mxu0 %v2889_v8 }
0x115c   : > { %v1664_v62 = vpop.f32.mrb[36].mxu0 }
0x115d   : > { %v1670_v63 = vpack.c.bf16 %v1664_v62, %v1664_v62  ;;  %v2490_v1 = vpop.f32.mrb[37].mxu0  ;;  %v2651_v62 = vld [vmem:[%s3461_s11 + $0x10] sm:$0xff]  }
0x115e   : > { %v1667_v2 = vpop.f32.mrb[38].mxu0  ;;  %v2291_v1 = vld [vmem:[%s3460_s10] ss:$0 sm:$0xff] }
0x115f   : > { %v2491_v3 = vpop.f32.mrb[39].mxu0  ;;  %2495 = vmatmul.mubr.msk.bf16.vlgmr.msra.gmra.mrb[44].mxu1 %vm595_vm2, %v1670_v63  ;;  %v2652_v63 = vld [vmem:[%s3461_s11 + $0x18] sm:$0xff]  }
0x1160   : > { %2506 = vmatprep.mubr.msk.bf16.mxu1 %vm2890_vm1, %v2889_v8 }
0x1164   : > { %v1762_v4 = vpop.f32.mrb[40].mxu0 }
0x1165   : > { %v1768_v5 = vmul.f32 0.17677669, %v1762_v4  ;;  %v2502_v6 = vpop.f32.mrb[41].mxu0 }
0x1166   : > { %v1765_v7 = vpop.f32.mrb[42].mxu0 }
0x1167   : > { %v2503_v9 = vpop.f32.mrb[43].mxu0  ;;  %v1769_v10 = vsel %vm643_vm3, %v1768_v5, -inf }
0x1168   : > { %1770 = vmax.xlane.f32.xlu1 %v1769_v10 }
0x11f5   : > { %v1771_v11 = vpop.xlane.xlu1 %1770 }
0x11f6   : > { %v1772_v12 = vsub.f32 %v1768_v5, %v1771_v11 }
0x11f8   : > { %v1773_v13 = vmul.f32 1.442695, %v1772_v12 }
0x11fa   : > { %2683 = vpow2.f32 %v1773_v13 }
0x1204   : > { %v2684_v14 = vpop.eup %2683 }
0x1205   : > { %v1775_v15 = vsel %vm643_vm3, %v2684_v14, 0.0 }
0x1206   : > { %1776 = vadd.xlane.f32.xlu0 %v1775_v15 }
0x121c   : > { %1781 = vrot.lane.b32.xlu0 %v3188_v25, %s2913_s17 }
0x1232   : > { %v1711_v19 = vpop.f32.mrb[44].mxu1 }
0x1233   : > { %v1717_v20 = vadd.f32 %v1711_v19, %v1558_v49  ;;  %v2496_v21 = vpop.f32.mrb[45].mxu1  ;;  %v2647_v49 = vld [vmem:[%s3459_s9] sm:$0xff]  }
0x1234   : > { %v1714_v22 = vpop.f32.mrb[46].mxu1 }
0x1235   : > { %v2497_v23 = vpop.f32.mrb[47].mxu1 }
0x1293   : > { %v1777_v24 = vpop.xlane.xlu0 %1776 }
0x1294   : > { %2685 = vrcp.f32 %v1777_v24 }
0x1297   : > { %v1782_v26 = vpop.permute.xlu0 %1781 }
0x1298   : > { %v1787_v27 = vsel %vm661_vm4, %v1782_v26, 0 }
0x1299   : > { %2505 = vmatpush3.bf16.msra.mxu1 %v1787_v27 }
0x129a   : > { %2516 = vmatprep.subr.bf16.mxu1 %v2889_v8 }
0x129e   : > { %v2686_v25 = vpop.eup %2685 }
0x129f   : > { %v1779_v28 = vmul.f32 %v2686_v25, %v2684_v14 }
0x12a1   : > { %v1780_v29 = vpack.c.bf16 %v1779_v28, %v1779_v28 }
0x12a3   : > { %2507 = vmatmul.mubr.msk.bf16.vlgmr.msra.gmra.mrb[48].mxu1 %vm643_vm3, %v1780_v29 }
0x12a4   : > { %2520 = vmatprep.mubr.msk.bf16.mxu1 %vm2890_vm1, %v2889_v8  ;;  %2517 = vmatpush3.bf16.msra.mxu1 %v2647_v49 }
0x12a5   : > { %2518 = vmatprep.subr.bf16.mxu1 %v2889_v8 }
0x1376   : > { %v1823_v30 = vpop.f32.mrb[48].mxu1 }
0x1377   : > { %v1829_v31 = vpack.c.bf16 %v1823_v30, %v1823_v30  ;;  %v2508_v32 = vpop.f32.mrb[49].mxu1 }
0x1378   : > { %v1826_v33 = vpop.f32.mrb[50].mxu1 }
0x1379   : > { %v2509_v34 = vpop.f32.mrb[51].mxu1  ;;  %2513 = vmatmul.mubr.msk.bf16.vlgmr.msra.gmra.mrb[44].mxu0 %vm595_vm2, %v1829_v31  ;;  %v2295_v33 = vld [vmem:[%s3462_s12] ss:$0 sm:$0xff] }
0x137a   : > { %2532 = vmatprep.mubr.msk.bf16.mxu0 %vm2890_vm1, %v2889_v8  ;;  %2525 = vmatpush3.bf16.msra.mxu0 %v2649_v60 }
0x137b   : > { %2526 = vmatprep.subr.bf16.mxu0 %v2889_v8 }
0x137e   : > { %2527 = vmatpush3.bf16.msra.mxu0 %v2650_v61 }
0x137f   : > { %2528 = vmatprep.subr.bf16.mxu0 %v2889_v8 }
0x1382   : > { %2529 = vmatpush3.bf16.msra.mxu0 %v2651_v62 }
0x1383   : > { %2530 = vmatprep.subr.bf16.mxu0 %v2889_v8 }
0x1386   : > { %2531 = vmatpush3.bf16.msra.mxu0 %v2652_v63 }
0x144c   : > { %v1874_v35 = vpop.f32.mrb[44].mxu0 }
0x144d   : > { %v1880_v37 = vadd.f32 %v1874_v35, %v1717_v20  ;;  %v2514_v38 = vpop.f32.mrb[45].mxu0 }
0x144e   : > { %v1877_v39 = vpop.f32.mrb[46].mxu0 }
0x144f   : > { %v1888_v40 = vadd.f32 %v2288_v36, %v1880_v37  ;;  %v2515_v41 = vpop.f32.mrb[47].mxu0 }
0x1451   : > { %v3366_v42 = vadd.f32 %v1888_v40, %v3159_v0  ;;  %v2648_v0 = vld [vmem:[%s3459_s9 + $0x8] sm:$0xff]  }
0x1452   : > { %2519 = vmatpush3.bf16.msra.mxu1 %v2648_v0 }
0x1453   : > { %v1892_v43 = vsel %vm491_vm0, %v3366_v42, 0.0 }
0x1454   : > { %1893 = vadd.xlane.f32.xlu1 %v1892_v43 }
0x14e1   : > { %v1894_v44 = vpop.xlane.xlu1 %1893 }
0x14e2   : > { %v1895_v45 = vmul.f32 0.03125, %v1894_v44 }
0x14e4   : > { %v1896_v46 = vsub.f32 %v3366_v42, %v1895_v45 }
0x14e6   : > { %v1897_v47 = vmul.f32 %v1896_v46, %v1896_v46 }
0x14e8   : > { %v1898_v48 = vsel %vm491_vm0, %v1897_v47, 0.0 }
0x14e9   : > { %1899 = vadd.xlane.f32.xlu1 %v1898_v48 }
0x1576   : > { %v1900_v50 = vpop.xlane.xlu1 %1899 }
0x1577   : > { %v1901_v51 = vmul.f32 0.03125, %v1900_v50 }
0x1579   : > { %v1902_v52 = vadd.f32 1e-05, %v1901_v51 }
0x157b   : > { %2687 = vrsqrt.f32 %v1902_v52 }
0x1585   : > { %v2688_v53 = vpop.eup %2687 }
0x1586   : > { %v1904_v55 = vmul.f32 %v2688_v53, %v1896_v46 }
0x1588   : > { %v1911_v57 = vmul.f32 %v2289_v54, %v1904_v55 }
0x158a   : > { %v1918_v58 = vadd.f32 %v2290_v56, %v1911_v57 }
0x158c   : > { %v1923_v59 = vpack.c.bf16 %v1918_v58, %v1918_v58 }
0x158e   : > { %2521 = vmatmul.mubr.msk.bf16.vlgmr.msra.gmra.mrb[52].mxu1 %vm491_vm0, %v1923_v59 }
0x1661   : > { %v1980_v2 = vpop.f32.mrb[52].mxu1 }
0x1662   : > { %v1981_v3 = vadd.f32 %v2291_v1, %v1980_v2  ;;  %v2522_v4 = vpop.f32.mrb[53].mxu1 }
0x1663   : > { %v1983_v5 = vpop.f32.mrb[54].mxu1 }
0x1664   : > { %v1987_v6 = vmul.f32 0.70710677, %v1981_v3  ;;  %v2523_v7 = vpop.f32.mrb[55].mxu1  ;;  %v1986_v29 = vmul.f32 0.5, %v1981_v3 }
0x1666   : > { %v1988_v9 = vand.u32 2147483647, %v1987_v6  ;;  %vm2008_vm6 = vcmp.ge.f32.partialorder %v1987_v6, 0.0 }
0x1668   : > { %v1989_v10 = vmul.f32 0.3275911, %v1988_v9  ;;  %v2002_v8 = vsub.f32 0.0, %v1988_v9 }
0x166a   : > { %v1990_v11 = vadd.f32 1.0, %v1989_v10  ;;  %v2003_v13 = vmul.f32 %v2002_v8, %v1988_v9 }
0x166c   : > { %2689 = vrcp.f32 %v1990_v11  ;;  %v2004_v16 = vmul.f32 1.442695, %v2003_v13 }
0x166e   : > { %2691 = vpow2.f32 %v2004_v16 }
0x1676   : > { %v2690_v12 = vpop.eup %2689 }
0x1677   : > { %v1993_v14 = vmul.f32 1.0614054, %v2690_v12 }
0x1678   : > { %v2692_v24 = vpop.eup %2691 }
0x1679   : > { %v1994_v15 = vadd.f32 -1.4531521, %v1993_v14 }
0x167b   : > { %v1995_v17 = vmul.f32 %v2690_v12, %v1994_v15 }
0x167d   : > { %v1996_v18 = vadd.f32 1.4214138, %v1995_v17 }
0x167f   : > { %v1997_v19 = vmul.f32 %v2690_v12, %v1996_v18 }
0x1681   : > { %v1998_v20 = vadd.f32 -0.28449672, %v1997_v19 }
0x1683   : > { %v1999_v21 = vmul.f32 %v2690_v12, %v1998_v20 }
0x1685   : > { %v2000_v22 = vadd.f32 0.2548296, %v1999_v21 }
0x1687   : > { %v2001_v23 = vmul.f32 %v2690_v12, %v2000_v22 }
0x1689   : > { %v2006_v26 = vmul.f32 %v2692_v24, %v2001_v23 }
0x168b   : > { %v2007_v27 = vsub.f32 1.0, %v2006_v26 }
0x168d   : > { %v2009_v25 = vsub.f32 0.0, %v2007_v27 }
0x168f   : > { %v2010_v28 = vsel %vm2008_vm6, %v2007_v27, %v2009_v25 }
0x1690   : > { %v2011_v30 = vadd.f32 1.0, %v2010_v28 }
0x1692   : > { %v2012_v31 = vmul.f32 %v2011_v30, %v1986_v29 }
0x1694   : > { %v2021_v32 = vpack.c.bf16 %v2012_v31, %v2012_v31 }
0x1696   : > { %2533 = vmatmul.mubr.msk.bf16.vlgmr.msra.gmra.mrb[48].mxu0 %vm2053_vm7, %v2021_v32 }
0x1769   : > { %v2091_v34 = vpop.f32.mrb[48].mxu0 }
0x176a   : > { %v2092_v35 = vadd.f32 %v2295_v33, %v2091_v34  ;;  %v2534_v36 = vpop.f32.mrb[49].mxu0 }
0x176b   : > { %v2094_v37 = vpop.f32.mrb[50].mxu0 }
0x176c   : > { %v2098_v38 = vmul.f32 0.70710677, %v2092_v35  ;;  %v2535_v39 = vpop.f32.mrb[51].mxu0  ;;  %v2097_v61 = vmul.f32 0.5, %v2092_v35 }
0x176e   : > { %v2099_v40 = vand.u32 2147483647, %v2098_v38  ;;  %vm2119_vm8 = vcmp.ge.f32.partialorder %v2098_v38, 0.0 }
0x1770   : > { %v2100_v41 = vmul.f32 0.3275911, %v2099_v40  ;;  %v2113_v44 = vsub.f32 0.0, %v2099_v40 }
0x1772   : > { %v2101_v43 = vadd.f32 1.0, %v2100_v41  ;;  %v2114_v46 = vmul.f32 %v2113_v44, %v2099_v40 }
0x1774   : > { %2693 = vrcp.f32 %v2101_v43  ;;  %v2115_v49 = vmul.f32 1.442695, %v2114_v46 }
0x1776   : > { %2695 = vpow2.f32 %v2115_v49 }
0x177e   : > { %v2694_v45 = vpop.eup %2693 }
0x177f   : > { %v2104_v47 = vmul.f32 1.0614054, %v2694_v45 }
0x1780   : > { %v2696_v56 = vpop.eup %2695 }
0x1781   : > { %v2105_v48 = vadd.f32 -1.4531521, %v2104_v47 }
0x1783   : > { %v2106_v0 = vmul.f32 %v2694_v45, %v2105_v48 }
0x1785   : > { %v2107_v50 = vadd.f32 1.4214138, %v2106_v0 }
0x1787   : > { %v2108_v51 = vmul.f32 %v2694_v45, %v2107_v50 }
0x1789   : > { %v2109_v52 = vadd.f32 -0.28449672, %v2108_v51 }
0x178b   : > { %v2110_v53 = vmul.f32 %v2694_v45, %v2109_v52 }
0x178d   : > { %v2111_v54 = vadd.f32 0.2548296, %v2110_v53 }
0x178f   : > { %v2112_v55 = vmul.f32 %v2694_v45, %v2111_v54 }
0x1791   : > { %v2117_v57 = vmul.f32 %v2696_v56, %v2112_v55 }
0x1793   : > { %v2118_v58 = vsub.f32 1.0, %v2117_v57 }
0x1795   : > { %v2120_v59 = vsub.f32 0.0, %v2118_v58 }
0x1797   : > { %v2121_v60 = vsel %vm2119_vm8, %v2118_v58, %v2120_v59 }
0x1798   : > { %v2122_v62 = vadd.f32 1.0, %v2121_v60 }
0x179a   : > { %v2123_v63 = vmul.f32 %v2122_v62, %v2097_v61 }
0x179c   : > { %v2124_v1 = vadd.f32 %v2123_v63, %v3366_v42 }
0x179e   : > { %2125 = vst.msk [vmem:[%s482_s25] sm:$0xff] %vm491_vm0, %v2124_v1 }
0x179f   : > { %2822 = shalt.err (!%p2819_p1)
}
0x17a0   : > { %s2823_s17 = scalar_lea.hbm %s3407_s22, 128  ;;  %s2827_s30 = scalar_lea.hbm %s3493_s14, 256 }
0x17a1   : > { %p2824_p0 = scmp.ne.s32.totalorder %s3407_s22, %s2823_s17  ;;  %p2828_p9 = scmp.lt.u32.totalorder %s3407_s22, %s3493_s14 }
0x17a2   : > { %p2829_p12 = scmp.lt.u32.totalorder %s2827_s30, %s2823_s17  ;;  %p2831_p2 = scmp.lt.u32.totalorder %s2823_s17, %s3407_s22 }
0x17a3   : > { %p2825_p6 = pnand %p2824_p0, %p3494_p3 }
0x17a4   : > { %p2830_p10 = por %p2829_p12, %p2828_p9 }
0x17a5   : > { %p2826_p5 = pneg %p2825_p6 }
0x17a6   : > { %p2832_p4 = por %p2831_p2, %p2830_p10 }
0x17a8   : > { %p2833_p7 = pnand %p2832_p4, %p2826_p5 }
0x17aa   : > { %2836 = shalt.err (!%p2833_p7)
}
0x17ab   : > { %2552 = dma.vmem_to_hbm [thread:$0]  (%p3494_p3), %s3409_s21, 128, %s3407_s22, %s2127_s24  }
0x17ac PF: > { %s3495_s15 = sld [smem:[#allocation17_spill]]  ;;  %s3496_s27 = sld [smem:[#allocation15_spill]] }
0x17ad   : > { %s3497_s13 = sld [smem:[#allocation20_spill]] }
0x17b2   : > { %p2579_p8 = scmp.ge.s32.totalorder %s3495_s15, 2  ;;  %s2152_s29 = sand.u32 1, %s3496_s27  }
0x17b3   : > { %p3498_p11 = scmp.ne.s32.totalorder %s3497_s13, 0  ;;  %s2153_s16 = scalar_lea.sflag [#allocation4], %s2152_s29 }
0x17b5   : > { %p2568_p13 = pnand %p2579_p8, %p3498_p11 }
0x17b7   : > { %2866 = dma.done.wait (!%p2568_p13), %s2153_s16, 128  }
0x17b8   : > { %2868 = vsyncadd (!%p2568_p13), %s2153_s16, 4294967168  ;;  %s3499_s28 = sld [smem:[#allocation18_spill]]  ;;  %s3500_s17 = sld [smem:[#allocation16_spill]] }
0x17b9   : > { %s3501_s27 = sld [smem:[#allocation19_spill]]  ;;  %s3502_s25 = smov %s2875_s26 }
0x17be   : > { %p26_p1 = scmp.ge.s32.totalorder %s3499_s28, 4   ;;  %s3503_s26 = smov %s3500_s17 }
0x17c0   :  { %28 = sbr.rel (!%p26_p1) target bundleno = 8 (0x8), region = 124 }
0x17c7   :  { %2158 = vsyncpa [#allocation3], 1 }
0x17c8   :  { %2160 = vsyncpa [#allocation3 + $0x1], 1 }
0x17c9   :  { %2161 = vsyncpa [#allocation6], 1 }
0x17ca   :  { %2162 = vsyncpa [#allocation9], 1 }
0x17cb   :  { %2163 = vsyncpa [#allocation4], 1 }
0x17cc   :  { %2165 = vsyncpa [#allocation4 + $0x1], 1 }

</bundles_post_ra>
